<compile_context>
chip_gen: v7x
topology: tpu7x:2x2x1
jax: 0.10.0
libtpu: 0.0.40
codegen_flags: <defaults>
</compile_context>

<pallas_src>
import jax
import jax.numpy as jnp
from jax.experimental import pallas as pl
from jax.experimental.pallas import tpu as pltpu


# ----------------------------- Pallas kernel ------------------------------ #
def _st_kernel(w1_ref, b1_ref, w2_ref, b2_ref, x_ref, o_ref):
    # x_ref block: (1, C, T, HWT) bf16. All arithmetic in f32.
    x = x_ref[0].astype(jnp.float32)                 # (C, T, HWT)
    C, T, HWT = x.shape

    def shifted(a):
        # a: (C, T, HWT) -> (prev, nxt)
        #   prev[:, t] = a[:, t-1]  (zeros at t = 0)
        #   nxt [:, t] = a[:, t+1]  (zeros at t = T-1)
        z = jnp.zeros((C, 1, HWT), jnp.float32)
        prev = jnp.concatenate([z, a[:, : T - 1, :]], axis=1)
        nxt = jnp.concatenate([a[:, 1:, :], z], axis=1)
        return prev, nxt

    def conv_channel(taps, w_ref, b_ref, co):
        # out[co] = b[co] + sum_{k, ci} w[co, k*C + ci] * taps[k][ci]
        # (k-major weight packing: k=0 -> t-1, k=1 -> t, k=2 -> t+1)
        acc = None
        for k in range(3):
            tap_k = taps[k]
            for ci in range(C):
                term = w_ref[co, k * C + ci] * tap_k[ci]      # SMEM scalar * (T, HWT)
                acc = term if acc is None else acc + term
        return acc + b_ref[co]

    # ---- conv1 + BN1 (folded) ----
    x_prev, x_next = shifted(x)
    taps1 = (x_prev, x, x_next)
    temp = jnp.stack(
        [conv_channel(taps1, w1_ref, b1_ref, co) for co in range(C)], axis=0
    )                                                # (C, T, HWT) f32

    # ---- conv2 + BN2 (folded), residual, sigmoid gate, multiply (fused epilogue) ----
    t_prev, t_next = shifted(temp)
    taps2 = (t_prev, temp, t_next)
    for co in range(C):
        st = temp[co] + conv_channel(taps2, w2_ref, b2_ref, co)
        o_ref[0, co] = (jax.nn.sigmoid(st) * x[co]).astype(o_ref.dtype)


# ------------------------------ JAX wrapper -------------------------------- #
def _pick_hw_tile(hw):
    # Lane-aligned tile (multiple of 128), capped at 512; otherwise the full width
    # (a full-extent last dim is always a legal block).
    for t in (512, 256, 128):
        if hw % t == 0:
            return t
    return hw


@jax.jit
def short_term_temporal_feature_v2(x, w1, b1, w2, b2):
    """x: (B, C, T, H, W) f32;  w*: (C, 3C) f32 (k-major);  b*: (C,) f32."""
    B, C, T, H, W = x.shape
    HW = H * W
    hw_tile = _pick_hw_tile(HW)
    n_hw = HW // hw_tile

    # bf16 on the wire, f32 math inside the kernel.
    x4 = x.reshape(B, C, T, HW).astype(jnp.bfloat16)

    smem = pl.BlockSpec(memory_space=pltpu.MemorySpace.SMEM)
    grid_spec = pltpu.PrefetchScalarGridSpec(
        num_scalar_prefetch=0,
        grid=(B, n_hw),
        in_specs=[
            smem,                                                  # w1 (C, 3C)
            smem,                                                  # b1 (C,)
            smem,                                                  # w2 (C, 3C)
            smem,                                                  # b2 (C,)
            pl.BlockSpec((1, C, T, hw_tile), lambda b, h: (b, 0, 0, h)),
        ],
        out_specs=pl.BlockSpec((1, C, T, hw_tile), lambda b, h: (b, 0, 0, h)),
    )

    out = pl.pallas_call(
        _st_kernel,
        out_shape=jax.ShapeDtypeStruct((B, C, T, HW), x.dtype),
        grid_spec=grid_spec,
        compiler_params=pltpu.CompilerParams(
            dimension_semantics=("parallel", "parallel"),
        ),
    )(w1, b1, w2, b2, x4)
    return out.reshape(B, C, T, H, W)


# ----------------------- BN folding + pure-JAX reference -------------------- #
def _fuse_conv_bn(conv_w, conv_b, gamma, beta, mean, var, eps=1e-5):
    """Fold eval-mode BatchNorm3d into a (3,1,1) Conv3d.

    conv_w: (Cout, Cin, 3, 1, 1), conv_b: (Cout,)
    Returns w_km: (Cout, 3*Cin) k-major (k=0 -> t-1, 1 -> t, 2 -> t+1), b: (Cout,).
    """
    scale = gamma / jnp.sqrt(var + eps)                          # (Cout,)
    w = conv_w[..., 0, 0] * scale[:, None, None]                 # (Cout, Cin, 3)
    b = (conv_b - mean) * scale + beta                           # (Cout,)
    w_km = jnp.transpose(w, (0, 2, 1)).reshape(w.shape[0], -1)   # (Cout, 3*Cin), k-major
    return w_km.astype(jnp.float32), b.astype(jnp.float32)


def _reference(x, w1, b1, w2, b2):
    B, C, T, H, W = x.shape
    x4 = x.reshape(B, C, T, H * W)

    def conv_t(inp, w, b):
        xp = jnp.pad(inp, ((0, 0), (0, 0), (1, 1), (0, 0)))
        # k-major stacking: [t-1 block | t block | t+1 block] along channels.
        windows = jnp.concatenate([xp[:, :, k:k + T, :] for k in range(3)], axis=1)
        out = jnp.einsum('ok,bkth->both', w, windows)
        return out + b[None, :, None, None]

    temp = conv_t(x4, w1, b1)
    st = temp + conv_t(temp, w2, b2)
    return (jax.nn.sigmoid(st) * x4).reshape(B, C, T, H, W)


# ---------------------------------- main ------------------------------------ #
if __name__ == "__main__":
    B, C, T, H, W = 2, 4, 8, 16, 16

    key = jax.random.PRNGKey(0)
    keys = jax.random.split(key, 3)

    x = jax.random.normal(keys[0], (B, C, T, H, W), dtype=jnp.float32)

    # Deterministic synthetic parameters (Conv3d weight shape: (C, C, 3, 1, 1)).
    def make_params(k):
        ks = jax.random.split(k, 6)
        conv_w = 0.1 * jax.random.normal(ks[0], (C, C, 3, 1, 1), jnp.float32)
        conv_b = 0.1 * jax.random.normal(ks[1], (C,), jnp.float32)
        gamma = 1.0 + 0.1 * jax.random.normal(ks[2], (C,), jnp.float32)
        beta = 0.1 * jax.random.normal(ks[3], (C,), jnp.float32)
        mean = 0.1 * jax.random.normal(ks[4], (C,), jnp.float32)
        var = jnp.abs(jax.random.normal(ks[5], (C,), jnp.float32)) + 0.5
        return conv_w, conv_b, gamma, beta, mean, var

    w1, b1 = _fuse_conv_bn(*make_params(keys[1]))
    w2, b2 = _fuse_conv_bn(*make_params(keys[2]))

    out = short_term_temporal_feature_v2(x, w1, b1, w2, b2)
    out = jax.block_until_ready(out)
    assert out.shape == (B, C, T, H, W)

    # Apples-to-apples check: the kernel streams x in bf16, so compare against the
    # f32 reference evaluated on the bf16-rounded activations (tight tolerance)...
    x_q = x.astype(jnp.bfloat16).astype(jnp.float32)
    ref_q = _reference(x_q, w1, b1, w2, b2)
    err_q = float(jnp.max(jnp.abs(out - ref_q)))
    assert jnp.allclose(out, ref_q, atol=5e-3, rtol=5e-3), err_q

    # ... and a looser check against the pure-f32 reference (bf16 input quantization
    # is the only difference; perf review suggested atol ~1e-2 scale tolerances).
    ref_f = _reference(x, w1, b1, w2, b2)
    err_f = float(jnp.max(jnp.abs(out - ref_f)))
    assert jnp.allclose(out, ref_f, atol=5e-2, rtol=5e-2), err_f

    print("KERNEL_OK")
</pallas_src>

<mosaic_0001>
module attributes {stable_mosaic.version = 11 : i64} {
  func.func @_st_kernel(%arg0: i32, %arg1: i32, %arg2: memref<4x12xf32, #tpu.memory_space<smem>>, %arg3: memref<4xf32, #tpu.memory_space<smem>>, %arg4: memref<4x12xf32, #tpu.memory_space<smem>>, %arg5: memref<4xf32, #tpu.memory_space<smem>>, %arg6: memref<1x4x8x256xbf16, #tpu.memory_space<vmem>>, %arg7: memref<1x4x8x256xf32, #tpu.memory_space<vmem>>) attributes {dimension_semantics = [#tpu.dimension_semantics<parallel>, #tpu.dimension_semantics<parallel>], iteration_bounds = array<i64: 2, 1>, scalar_prefetch = 0 : i64, scratch_operands = 0 : i64, tpu.core_type = #tpu.core_type<tc>, window_params = [{transform_indices = @transform_0, window_bounds = array<i64: 4, 12>}, {transform_indices = @transform_1, window_bounds = array<i64: 4>}, {transform_indices = @transform_2, window_bounds = array<i64: 4, 12>}, {transform_indices = @transform_3, window_bounds = array<i64: 4>}, {transform_indices = @transform_4, window_bounds = array<i64: 1, 4, 8, 256>}, {transform_indices = @transform_5, window_bounds = array<i64: 1, 4, 8, 256>}]} {
    %c0 = arith.constant 0 : index
    %c0_0 = arith.constant 0 : index
    %c0_1 = arith.constant 0 : index
    %c0_2 = arith.constant 0 : index
    %0 = vector.load %arg6[%c0, %c0_0, %c0_1, %c0_2] : memref<1x4x8x256xbf16, #tpu.memory_space<vmem>>, vector<1x4x8x256xbf16>
    %1 = vector.shape_cast %0 : vector<1x4x8x256xbf16> to vector<4x8x256xbf16>
    %2 = arith.extf %1 : vector<4x8x256xbf16> to vector<4x8x256xf32>
    %cst = arith.constant 0.000000e+00 : f32
    %3 = vector.broadcast %cst : f32 to vector<4x1x256xf32>
    %4 = vector.extract_strided_slice %2 {offsets = [0, 0, 0], sizes = [4, 7, 256], strides = [1, 1, 1]} : vector<4x8x256xf32> to vector<4x7x256xf32>
    %5 = tpu.concatenate %3, %4 in 1 : vector<4x1x256xf32>, vector<4x7x256xf32> -> vector<4x8x256xf32>
    %6 = vector.extract_strided_slice %2 {offsets = [0, 1, 0], sizes = [4, 7, 256], strides = [1, 1, 1]} : vector<4x8x256xf32> to vector<4x7x256xf32>
    %7 = tpu.concatenate %6, %3 in 1 : vector<4x7x256xf32>, vector<4x1x256xf32> -> vector<4x8x256xf32>
    %c0_3 = arith.constant 0 : index
    %c0_4 = arith.constant 0 : index
    %8 = memref.load %arg2[%c0_3, %c0_4] : memref<4x12xf32, #tpu.memory_space<smem>>
    %9 = vector.extract_strided_slice %5 {offsets = [0, 0, 0], sizes = [1, 8, 256], strides = [1, 1, 1]} : vector<4x8x256xf32> to vector<1x8x256xf32>
    %10 = vector.shape_cast %9 : vector<1x8x256xf32> to vector<8x256xf32>
    %11 = vector.broadcast %8 : f32 to vector<8x256xf32>
    %12 = arith.mulf %11, %10 : vector<8x256xf32>
    %c0_5 = arith.constant 0 : index
    %c1 = arith.constant 1 : index
    %13 = memref.load %arg2[%c0_5, %c1] : memref<4x12xf32, #tpu.memory_space<smem>>
    %14 = vector.extract_strided_slice %5 {offsets = [1, 0, 0], sizes = [1, 8, 256], strides = [1, 1, 1]} : vector<4x8x256xf32> to vector<1x8x256xf32>
    %15 = vector.shape_cast %14 : vector<1x8x256xf32> to vector<8x256xf32>
    %16 = vector.broadcast %13 : f32 to vector<8x256xf32>
    %17 = arith.mulf %16, %15 : vector<8x256xf32>
    %18 = arith.addf %12, %17 : vector<8x256xf32>
    %c0_6 = arith.constant 0 : index
    %c2 = arith.constant 2 : index
    %19 = memref.load %arg2[%c0_6, %c2] : memref<4x12xf32, #tpu.memory_space<smem>>
    %20 = vector.extract_strided_slice %5 {offsets = [2, 0, 0], sizes = [1, 8, 256], strides = [1, 1, 1]} : vector<4x8x256xf32> to vector<1x8x256xf32>
    %21 = vector.shape_cast %20 : vector<1x8x256xf32> to vector<8x256xf32>
    %22 = vector.broadcast %19 : f32 to vector<8x256xf32>
    %23 = arith.mulf %22, %21 : vector<8x256xf32>
    %24 = arith.addf %18, %23 : vector<8x256xf32>
    %c0_7 = arith.constant 0 : index
    %c3 = arith.constant 3 : index
    %25 = memref.load %arg2[%c0_7, %c3] : memref<4x12xf32, #tpu.memory_space<smem>>
    %26 = vector.extract_strided_slice %5 {offsets = [3, 0, 0], sizes = [1, 8, 256], strides = [1, 1, 1]} : vector<4x8x256xf32> to vector<1x8x256xf32>
    %27 = vector.shape_cast %26 : vector<1x8x256xf32> to vector<8x256xf32>
    %28 = vector.broadcast %25 : f32 to vector<8x256xf32>
    %29 = arith.mulf %28, %27 : vector<8x256xf32>
    %30 = arith.addf %24, %29 : vector<8x256xf32>
    %c0_8 = arith.constant 0 : index
    %c4 = arith.constant 4 : index
    %31 = memref.load %arg2[%c0_8, %c4] : memref<4x12xf32, #tpu.memory_space<smem>>
    %32 = vector.extract_strided_slice %2 {offsets = [0, 0, 0], sizes = [1, 8, 256], strides = [1, 1, 1]} : vector<4x8x256xf32> to vector<1x8x256xf32>
    %33 = vector.shape_cast %32 : vector<1x8x256xf32> to vector<8x256xf32>
    %34 = vector.broadcast %31 : f32 to vector<8x256xf32>
    %35 = arith.mulf %34, %33 : vector<8x256xf32>
    %36 = arith.addf %30, %35 : vector<8x256xf32>
    %c0_9 = arith.constant 0 : index
    %c5 = arith.constant 5 : index
    %37 = memref.load %arg2[%c0_9, %c5] : memref<4x12xf32, #tpu.memory_space<smem>>
    %38 = vector.extract_strided_slice %2 {offsets = [1, 0, 0], sizes = [1, 8, 256], strides = [1, 1, 1]} : vector<4x8x256xf32> to vector<1x8x256xf32>
    %39 = vector.shape_cast %38 : vector<1x8x256xf32> to vector<8x256xf32>
    %40 = vector.broadcast %37 : f32 to vector<8x256xf32>
    %41 = arith.mulf %40, %39 : vector<8x256xf32>
    %42 = arith.addf %36, %41 : vector<8x256xf32>
    %c0_10 = arith.constant 0 : index
    %c6 = arith.constant 6 : index
    %43 = memref.load %arg2[%c0_10, %c6] : memref<4x12xf32, #tpu.memory_space<smem>>
    %44 = vector.extract_strided_slice %2 {offsets = [2, 0, 0], sizes = [1, 8, 256], strides = [1, 1, 1]} : vector<4x8x256xf32> to vector<1x8x256xf32>
    %45 = vector.shape_cast %44 : vector<1x8x256xf32> to vector<8x256xf32>
    %46 = vector.broadcast %43 : f32 to vector<8x256xf32>
    %47 = arith.mulf %46, %45 : vector<8x256xf32>
    %48 = arith.addf %42, %47 : vector<8x256xf32>
    %c0_11 = arith.constant 0 : index
    %c7 = arith.constant 7 : index
    %49 = memref.load %arg2[%c0_11, %c7] : memref<4x12xf32, #tpu.memory_space<smem>>
    %50 = vector.extract_strided_slice %2 {offsets = [3, 0, 0], sizes = [1, 8, 256], strides = [1, 1, 1]} : vector<4x8x256xf32> to vector<1x8x256xf32>
    %51 = vector.shape_cast %50 : vector<1x8x256xf32> to vector<8x256xf32>
    %52 = vector.broadcast %49 : f32 to vector<8x256xf32>
    %53 = arith.mulf %52, %51 : vector<8x256xf32>
    %54 = arith.addf %48, %53 : vector<8x256xf32>
    %c0_12 = arith.constant 0 : index
    %c8 = arith.constant 8 : index
    %55 = memref.load %arg2[%c0_12, %c8] : memref<4x12xf32, #tpu.memory_space<smem>>
    %56 = vector.extract_strided_slice %7 {offsets = [0, 0, 0], sizes = [1, 8, 256], strides = [1, 1, 1]} : vector<4x8x256xf32> to vector<1x8x256xf32>
    %57 = vector.shape_cast %56 : vector<1x8x256xf32> to vector<8x256xf32>
    %58 = vector.broadcast %55 : f32 to vector<8x256xf32>
    %59 = arith.mulf %58, %57 : vector<8x256xf32>
    %60 = arith.addf %54, %59 : vector<8x256xf32>
    %c0_13 = arith.constant 0 : index
    %c9 = arith.constant 9 : index
    %61 = memref.load %arg2[%c0_13, %c9] : memref<4x12xf32, #tpu.memory_space<smem>>
    %62 = vector.extract_strided_slice %7 {offsets = [1, 0, 0], sizes = [1, 8, 256], strides = [1, 1, 1]} : vector<4x8x256xf32> to vector<1x8x256xf32>
    %63 = vector.shape_cast %62 : vector<1x8x256xf32> to vector<8x256xf32>
    %64 = vector.broadcast %61 : f32 to vector<8x256xf32>
    %65 = arith.mulf %64, %63 : vector<8x256xf32>
    %66 = arith.addf %60, %65 : vector<8x256xf32>
    %c0_14 = arith.constant 0 : index
    %c10 = arith.constant 10 : index
    %67 = memref.load %arg2[%c0_14, %c10] : memref<4x12xf32, #tpu.memory_space<smem>>
    %68 = vector.extract_strided_slice %7 {offsets = [2, 0, 0], sizes = [1, 8, 256], strides = [1, 1, 1]} : vector<4x8x256xf32> to vector<1x8x256xf32>
    %69 = vector.shape_cast %68 : vector<1x8x256xf32> to vector<8x256xf32>
    %70 = vector.broadcast %67 : f32 to vector<8x256xf32>
    %71 = arith.mulf %70, %69 : vector<8x256xf32>
    %72 = arith.addf %66, %71 : vector<8x256xf32>
    %c0_15 = arith.constant 0 : index
    %c11 = arith.constant 11 : index
    %73 = memref.load %arg2[%c0_15, %c11] : memref<4x12xf32, #tpu.memory_space<smem>>
    %74 = vector.extract_strided_slice %7 {offsets = [3, 0, 0], sizes = [1, 8, 256], strides = [1, 1, 1]} : vector<4x8x256xf32> to vector<1x8x256xf32>
    %75 = vector.shape_cast %74 : vector<1x8x256xf32> to vector<8x256xf32>
    %76 = vector.broadcast %73 : f32 to vector<8x256xf32>
    %77 = arith.mulf %76, %75 : vector<8x256xf32>
    %78 = arith.addf %72, %77 : vector<8x256xf32>
    %c0_16 = arith.constant 0 : index
    %79 = memref.load %arg3[%c0_16] : memref<4xf32, #tpu.memory_space<smem>>
    %80 = vector.broadcast %79 : f32 to vector<8x256xf32>
    %81 = arith.addf %78, %80 : vector<8x256xf32>
    %c1_17 = arith.constant 1 : index
    %c0_18 = arith.constant 0 : index
    %82 = memref.load %arg2[%c1_17, %c0_18] : memref<4x12xf32, #tpu.memory_space<smem>>
    %83 = vector.extract_strided_slice %5 {offsets = [0, 0, 0], sizes = [1, 8, 256], strides = [1, 1, 1]} : vector<4x8x256xf32> to vector<1x8x256xf32>
    %84 = vector.shape_cast %83 : vector<1x8x256xf32> to vector<8x256xf32>
    %85 = vector.broadcast %82 : f32 to vector<8x256xf32>
    %86 = arith.mulf %85, %84 : vector<8x256xf32>
    %c1_19 = arith.constant 1 : index
    %c1_20 = arith.constant 1 : index
    %87 = memref.load %arg2[%c1_19, %c1_20] : memref<4x12xf32, #tpu.memory_space<smem>>
    %88 = vector.extract_strided_slice %5 {offsets = [1, 0, 0], sizes = [1, 8, 256], strides = [1, 1, 1]} : vector<4x8x256xf32> to vector<1x8x256xf32>
    %89 = vector.shape_cast %88 : vector<1x8x256xf32> to vector<8x256xf32>
    %90 = vector.broadcast %87 : f32 to vector<8x256xf32>
    %91 = arith.mulf %90, %89 : vector<8x256xf32>
    %92 = arith.addf %86, %91 : vector<8x256xf32>
    %c1_21 = arith.constant 1 : index
    %c2_22 = arith.constant 2 : index
    %93 = memref.load %arg2[%c1_21, %c2_22] : memref<4x12xf32, #tpu.memory_space<smem>>
    %94 = vector.extract_strided_slice %5 {offsets = [2, 0, 0], sizes = [1, 8, 256], strides = [1, 1, 1]} : vector<4x8x256xf32> to vector<1x8x256xf32>
    %95 = vector.shape_cast %94 : vector<1x8x256xf32> to vector<8x256xf32>
    %96 = vector.broadcast %93 : f32 to vector<8x256xf32>
    %97 = arith.mulf %96, %95 : vector<8x256xf32>
    %98 = arith.addf %92, %97 : vector<8x256xf32>
    %c1_23 = arith.constant 1 : index
    %c3_24 = arith.constant 3 : index
    %99 = memref.load %arg2[%c1_23, %c3_24] : memref<4x12xf32, #tpu.memory_space<smem>>
    %100 = vector.extract_strided_slice %5 {offsets = [3, 0, 0], sizes = [1, 8, 256], strides = [1, 1, 1]} : vector<4x8x256xf32> to vector<1x8x256xf32>
    %101 = vector.shape_cast %100 : vector<1x8x256xf32> to vector<8x256xf32>
    %102 = vector.broadcast %99 : f32 to vector<8x256xf32>
    %103 = arith.mulf %102, %101 : vector<8x256xf32>
    %104 = arith.addf %98, %103 : vector<8x256xf32>
    %c1_25 = arith.constant 1 : index
    %c4_26 = arith.constant 4 : index
    %105 = memref.load %arg2[%c1_25, %c4_26] : memref<4x12xf32, #tpu.memory_space<smem>>
    %106 = vector.extract_strided_slice %2 {offsets = [0, 0, 0], sizes = [1, 8, 256], strides = [1, 1, 1]} : vector<4x8x256xf32> to vector<1x8x256xf32>
    %107 = vector.shape_cast %106 : vector<1x8x256xf32> to vector<8x256xf32>
    %108 = vector.broadcast %105 : f32 to vector<8x256xf32>
    %109 = arith.mulf %108, %107 : vector<8x256xf32>
    %110 = arith.addf %104, %109 : vector<8x256xf32>
    %c1_27 = arith.constant 1 : index
    %c5_28 = arith.constant 5 : index
    %111 = memref.load %arg2[%c1_27, %c5_28] : memref<4x12xf32, #tpu.memory_space<smem>>
    %112 = vector.extract_strided_slice %2 {offsets = [1, 0, 0], sizes = [1, 8, 256], strides = [1, 1, 1]} : vector<4x8x256xf32> to vector<1x8x256xf32>
    %113 = vector.shape_cast %112 : vector<1x8x256xf32> to vector<8x256xf32>
    %114 = vector.broadcast %111 : f32 to vector<8x256xf32>
    %115 = arith.mulf %114, %113 : vector<8x256xf32>
    %116 = arith.addf %110, %115 : vector<8x256xf32>
    %c1_29 = arith.constant 1 : index
    %c6_30 = arith.constant 6 : index
    %117 = memref.load %arg2[%c1_29, %c6_30] : memref<4x12xf32, #tpu.memory_space<smem>>
    %118 = vector.extract_strided_slice %2 {offsets = [2, 0, 0], sizes = [1, 8, 256], strides = [1, 1, 1]} : vector<4x8x256xf32> to vector<1x8x256xf32>
    %119 = vector.shape_cast %118 : vector<1x8x256xf32> to vector<8x256xf32>
    %120 = vector.broadcast %117 : f32 to vector<8x256xf32>
    %121 = arith.mulf %120, %119 : vector<8x256xf32>
    %122 = arith.addf %116, %121 : vector<8x256xf32>
    %c1_31 = arith.constant 1 : index
    %c7_32 = arith.constant 7 : index
    %123 = memref.load %arg2[%c1_31, %c7_32] : memref<4x12xf32, #tpu.memory_space<smem>>
    %124 = vector.extract_strided_slice %2 {offsets = [3, 0, 0], sizes = [1, 8, 256], strides = [1, 1, 1]} : vector<4x8x256xf32> to vector<1x8x256xf32>
    %125 = vector.shape_cast %124 : vector<1x8x256xf32> to vector<8x256xf32>
    %126 = vector.broadcast %123 : f32 to vector<8x256xf32>
    %127 = arith.mulf %126, %125 : vector<8x256xf32>
    %128 = arith.addf %122, %127 : vector<8x256xf32>
    %c1_33 = arith.constant 1 : index
    %c8_34 = arith.constant 8 : index
    %129 = memref.load %arg2[%c1_33, %c8_34] : memref<4x12xf32, #tpu.memory_space<smem>>
    %130 = vector.extract_strided_slice %7 {offsets = [0, 0, 0], sizes = [1, 8, 256], strides = [1, 1, 1]} : vector<4x8x256xf32> to vector<1x8x256xf32>
    %131 = vector.shape_cast %130 : vector<1x8x256xf32> to vector<8x256xf32>
    %132 = vector.broadcast %129 : f32 to vector<8x256xf32>
    %133 = arith.mulf %132, %131 : vector<8x256xf32>
    %134 = arith.addf %128, %133 : vector<8x256xf32>
    %c1_35 = arith.constant 1 : index
    %c9_36 = arith.constant 9 : index
    %135 = memref.load %arg2[%c1_35, %c9_36] : memref<4x12xf32, #tpu.memory_space<smem>>
    %136 = vector.extract_strided_slice %7 {offsets = [1, 0, 0], sizes = [1, 8, 256], strides = [1, 1, 1]} : vector<4x8x256xf32> to vector<1x8x256xf32>
    %137 = vector.shape_cast %136 : vector<1x8x256xf32> to vector<8x256xf32>
    %138 = vector.broadcast %135 : f32 to vector<8x256xf32>
    %139 = arith.mulf %138, %137 : vector<8x256xf32>
    %140 = arith.addf %134, %139 : vector<8x256xf32>
    %c1_37 = arith.constant 1 : index
    %c10_38 = arith.constant 10 : index
    %141 = memref.load %arg2[%c1_37, %c10_38] : memref<4x12xf32, #tpu.memory_space<smem>>
    %142 = vector.extract_strided_slice %7 {offsets = [2, 0, 0], sizes = [1, 8, 256], strides = [1, 1, 1]} : vector<4x8x256xf32> to vector<1x8x256xf32>
    %143 = vector.shape_cast %142 : vector<1x8x256xf32> to vector<8x256xf32>
    %144 = vector.broadcast %141 : f32 to vector<8x256xf32>
    %145 = arith.mulf %144, %143 : vector<8x256xf32>
    %146 = arith.addf %140, %145 : vector<8x256xf32>
    %c1_39 = arith.constant 1 : index
    %c11_40 = arith.constant 11 : index
    %147 = memref.load %arg2[%c1_39, %c11_40] : memref<4x12xf32, #tpu.memory_space<smem>>
    %148 = vector.extract_strided_slice %7 {offsets = [3, 0, 0], sizes = [1, 8, 256], strides = [1, 1, 1]} : vector<4x8x256xf32> to vector<1x8x256xf32>
    %149 = vector.shape_cast %148 : vector<1x8x256xf32> to vector<8x256xf32>
    %150 = vector.broadcast %147 : f32 to vector<8x256xf32>
    %151 = arith.mulf %150, %149 : vector<8x256xf32>
    %152 = arith.addf %146, %151 : vector<8x256xf32>
    %c1_41 = arith.constant 1 : index
    %153 = memref.load %arg3[%c1_41] : memref<4xf32, #tpu.memory_space<smem>>
    %154 = vector.broadcast %153 : f32 to vector<8x256xf32>
    %155 = arith.addf %152, %154 : vector<8x256xf32>
    %c2_42 = arith.constant 2 : index
    %c0_43 = arith.constant 0 : index
    %156 = memref.load %arg2[%c2_42, %c0_43] : memref<4x12xf32, #tpu.memory_space<smem>>
    %157 = vector.extract_strided_slice %5 {offsets = [0, 0, 0], sizes = [1, 8, 256], strides = [1, 1, 1]} : vector<4x8x256xf32> to vector<1x8x256xf32>
    %158 = vector.shape_cast %157 : vector<1x8x256xf32> to vector<8x256xf32>
    %159 = vector.broadcast %156 : f32 to vector<8x256xf32>
    %160 = arith.mulf %159, %158 : vector<8x256xf32>
    %c2_44 = arith.constant 2 : index
    %c1_45 = arith.constant 1 : index
    %161 = memref.load %arg2[%c2_44, %c1_45] : memref<4x12xf32, #tpu.memory_space<smem>>
    %162 = vector.extract_strided_slice %5 {offsets = [1, 0, 0], sizes = [1, 8, 256], strides = [1, 1, 1]} : vector<4x8x256xf32> to vector<1x8x256xf32>
    %163 = vector.shape_cast %162 : vector<1x8x256xf32> to vector<8x256xf32>
    %164 = vector.broadcast %161 : f32 to vector<8x256xf32>
    %165 = arith.mulf %164, %163 : vector<8x256xf32>
    %166 = arith.addf %160, %165 : vector<8x256xf32>
    %c2_46 = arith.constant 2 : index
    %c2_47 = arith.constant 2 : index
    %167 = memref.load %arg2[%c2_46, %c2_47] : memref<4x12xf32, #tpu.memory_space<smem>>
    %168 = vector.extract_strided_slice %5 {offsets = [2, 0, 0], sizes = [1, 8, 256], strides = [1, 1, 1]} : vector<4x8x256xf32> to vector<1x8x256xf32>
    %169 = vector.shape_cast %168 : vector<1x8x256xf32> to vector<8x256xf32>
    %170 = vector.broadcast %167 : f32 to vector<8x256xf32>
    %171 = arith.mulf %170, %169 : vector<8x256xf32>
    %172 = arith.addf %166, %171 : vector<8x256xf32>
    %c2_48 = arith.constant 2 : index
    %c3_49 = arith.constant 3 : index
    %173 = memref.load %arg2[%c2_48, %c3_49] : memref<4x12xf32, #tpu.memory_space<smem>>
    %174 = vector.extract_strided_slice %5 {offsets = [3, 0, 0], sizes = [1, 8, 256], strides = [1, 1, 1]} : vector<4x8x256xf32> to vector<1x8x256xf32>
    %175 = vector.shape_cast %174 : vector<1x8x256xf32> to vector<8x256xf32>
    %176 = vector.broadcast %173 : f32 to vector<8x256xf32>
    %177 = arith.mulf %176, %175 : vector<8x256xf32>
    %178 = arith.addf %172, %177 : vector<8x256xf32>
    %c2_50 = arith.constant 2 : index
    %c4_51 = arith.constant 4 : index
    %179 = memref.load %arg2[%c2_50, %c4_51] : memref<4x12xf32, #tpu.memory_space<smem>>
    %180 = vector.extract_strided_slice %2 {offsets = [0, 0, 0], sizes = [1, 8, 256], strides = [1, 1, 1]} : vector<4x8x256xf32> to vector<1x8x256xf32>
    %181 = vector.shape_cast %180 : vector<1x8x256xf32> to vector<8x256xf32>
    %182 = vector.broadcast %179 : f32 to vector<8x256xf32>
    %183 = arith.mulf %182, %181 : vector<8x256xf32>
    %184 = arith.addf %178, %183 : vector<8x256xf32>
    %c2_52 = arith.constant 2 : index
    %c5_53 = arith.constant 5 : index
    %185 = memref.load %arg2[%c2_52, %c5_53] : memref<4x12xf32, #tpu.memory_space<smem>>
    %186 = vector.extract_strided_slice %2 {offsets = [1, 0, 0], sizes = [1, 8, 256], strides = [1, 1, 1]} : vector<4x8x256xf32> to vector<1x8x256xf32>
    %187 = vector.shape_cast %186 : vector<1x8x256xf32> to vector<8x256xf32>
    %188 = vector.broadcast %185 : f32 to vector<8x256xf32>
    %189 = arith.mulf %188, %187 : vector<8x256xf32>
    %190 = arith.addf %184, %189 : vector<8x256xf32>
    %c2_54 = arith.constant 2 : index
    %c6_55 = arith.constant 6 : index
    %191 = memref.load %arg2[%c2_54, %c6_55] : memref<4x12xf32, #tpu.memory_space<smem>>
    %192 = vector.extract_strided_slice %2 {offsets = [2, 0, 0], sizes = [1, 8, 256], strides = [1, 1, 1]} : vector<4x8x256xf32> to vector<1x8x256xf32>
    %193 = vector.shape_cast %192 : vector<1x8x256xf32> to vector<8x256xf32>
    %194 = vector.broadcast %191 : f32 to vector<8x256xf32>
    %195 = arith.mulf %194, %193 : vector<8x256xf32>
    %196 = arith.addf %190, %195 : vector<8x256xf32>
    %c2_56 = arith.constant 2 : index
    %c7_57 = arith.constant 7 : index
    %197 = memref.load %arg2[%c2_56, %c7_57] : memref<4x12xf32, #tpu.memory_space<smem>>
    %198 = vector.extract_strided_slice %2 {offsets = [3, 0, 0], sizes = [1, 8, 256], strides = [1, 1, 1]} : vector<4x8x256xf32> to vector<1x8x256xf32>
    %199 = vector.shape_cast %198 : vector<1x8x256xf32> to vector<8x256xf32>
    %200 = vector.broadcast %197 : f32 to vector<8x256xf32>
    %201 = arith.mulf %200, %199 : vector<8x256xf32>
    %202 = arith.addf %196, %201 : vector<8x256xf32>
    %c2_58 = arith.constant 2 : index
    %c8_59 = arith.constant 8 : index
    %203 = memref.load %arg2[%c2_58, %c8_59] : memref<4x12xf32, #tpu.memory_space<smem>>
    %204 = vector.extract_strided_slice %7 {offsets = [0, 0, 0], sizes = [1, 8, 256], strides = [1, 1, 1]} : vector<4x8x256xf32> to vector<1x8x256xf32>
    %205 = vector.shape_cast %204 : vector<1x8x256xf32> to vector<8x256xf32>
    %206 = vector.broadcast %203 : f32 to vector<8x256xf32>
    %207 = arith.mulf %206, %205 : vector<8x256xf32>
    %208 = arith.addf %202, %207 : vector<8x256xf32>
    %c2_60 = arith.constant 2 : index
    %c9_61 = arith.constant 9 : index
    %209 = memref.load %arg2[%c2_60, %c9_61] : memref<4x12xf32, #tpu.memory_space<smem>>
    %210 = vector.extract_strided_slice %7 {offsets = [1, 0, 0], sizes = [1, 8, 256], strides = [1, 1, 1]} : vector<4x8x256xf32> to vector<1x8x256xf32>
    %211 = vector.shape_cast %210 : vector<1x8x256xf32> to vector<8x256xf32>
    %212 = vector.broadcast %209 : f32 to vector<8x256xf32>
    %213 = arith.mulf %212, %211 : vector<8x256xf32>
    %214 = arith.addf %208, %213 : vector<8x256xf32>
    %c2_62 = arith.constant 2 : index
    %c10_63 = arith.constant 10 : index
    %215 = memref.load %arg2[%c2_62, %c10_63] : memref<4x12xf32, #tpu.memory_space<smem>>
    %216 = vector.extract_strided_slice %7 {offsets = [2, 0, 0], sizes = [1, 8, 256], strides = [1, 1, 1]} : vector<4x8x256xf32> to vector<1x8x256xf32>
    %217 = vector.shape_cast %216 : vector<1x8x256xf32> to vector<8x256xf32>
    %218 = vector.broadcast %215 : f32 to vector<8x256xf32>
    %219 = arith.mulf %218, %217 : vector<8x256xf32>
    %220 = arith.addf %214, %219 : vector<8x256xf32>
    %c2_64 = arith.constant 2 : index
    %c11_65 = arith.constant 11 : index
    %221 = memref.load %arg2[%c2_64, %c11_65] : memref<4x12xf32, #tpu.memory_space<smem>>
    %222 = vector.extract_strided_slice %7 {offsets = [3, 0, 0], sizes = [1, 8, 256], strides = [1, 1, 1]} : vector<4x8x256xf32> to vector<1x8x256xf32>
    %223 = vector.shape_cast %222 : vector<1x8x256xf32> to vector<8x256xf32>
    %224 = vector.broadcast %221 : f32 to vector<8x256xf32>
    %225 = arith.mulf %224, %223 : vector<8x256xf32>
    %226 = arith.addf %220, %225 : vector<8x256xf32>
    %c2_66 = arith.constant 2 : index
    %227 = memref.load %arg3[%c2_66] : memref<4xf32, #tpu.memory_space<smem>>
    %228 = vector.broadcast %227 : f32 to vector<8x256xf32>
    %229 = arith.addf %226, %228 : vector<8x256xf32>
    %c3_67 = arith.constant 3 : index
    %c0_68 = arith.constant 0 : index
    %230 = memref.load %arg2[%c3_67, %c0_68] : memref<4x12xf32, #tpu.memory_space<smem>>
    %231 = vector.extract_strided_slice %5 {offsets = [0, 0, 0], sizes = [1, 8, 256], strides = [1, 1, 1]} : vector<4x8x256xf32> to vector<1x8x256xf32>
    %232 = vector.shape_cast %231 : vector<1x8x256xf32> to vector<8x256xf32>
    %233 = vector.broadcast %230 : f32 to vector<8x256xf32>
    %234 = arith.mulf %233, %232 : vector<8x256xf32>
    %c3_69 = arith.constant 3 : index
    %c1_70 = arith.constant 1 : index
    %235 = memref.load %arg2[%c3_69, %c1_70] : memref<4x12xf32, #tpu.memory_space<smem>>
    %236 = vector.extract_strided_slice %5 {offsets = [1, 0, 0], sizes = [1, 8, 256], strides = [1, 1, 1]} : vector<4x8x256xf32> to vector<1x8x256xf32>
    %237 = vector.shape_cast %236 : vector<1x8x256xf32> to vector<8x256xf32>
    %238 = vector.broadcast %235 : f32 to vector<8x256xf32>
    %239 = arith.mulf %238, %237 : vector<8x256xf32>
    %240 = arith.addf %234, %239 : vector<8x256xf32>
    %c3_71 = arith.constant 3 : index
    %c2_72 = arith.constant 2 : index
    %241 = memref.load %arg2[%c3_71, %c2_72] : memref<4x12xf32, #tpu.memory_space<smem>>
    %242 = vector.extract_strided_slice %5 {offsets = [2, 0, 0], sizes = [1, 8, 256], strides = [1, 1, 1]} : vector<4x8x256xf32> to vector<1x8x256xf32>
    %243 = vector.shape_cast %242 : vector<1x8x256xf32> to vector<8x256xf32>
    %244 = vector.broadcast %241 : f32 to vector<8x256xf32>
    %245 = arith.mulf %244, %243 : vector<8x256xf32>
    %246 = arith.addf %240, %245 : vector<8x256xf32>
    %c3_73 = arith.constant 3 : index
    %c3_74 = arith.constant 3 : index
    %247 = memref.load %arg2[%c3_73, %c3_74] : memref<4x12xf32, #tpu.memory_space<smem>>
    %248 = vector.extract_strided_slice %5 {offsets = [3, 0, 0], sizes = [1, 8, 256], strides = [1, 1, 1]} : vector<4x8x256xf32> to vector<1x8x256xf32>
    %249 = vector.shape_cast %248 : vector<1x8x256xf32> to vector<8x256xf32>
    %250 = vector.broadcast %247 : f32 to vector<8x256xf32>
    %251 = arith.mulf %250, %249 : vector<8x256xf32>
    %252 = arith.addf %246, %251 : vector<8x256xf32>
    %c3_75 = arith.constant 3 : index
    %c4_76 = arith.constant 4 : index
    %253 = memref.load %arg2[%c3_75, %c4_76] : memref<4x12xf32, #tpu.memory_space<smem>>
    %254 = vector.extract_strided_slice %2 {offsets = [0, 0, 0], sizes = [1, 8, 256], strides = [1, 1, 1]} : vector<4x8x256xf32> to vector<1x8x256xf32>
    %255 = vector.shape_cast %254 : vector<1x8x256xf32> to vector<8x256xf32>
    %256 = vector.broadcast %253 : f32 to vector<8x256xf32>
    %257 = arith.mulf %256, %255 : vector<8x256xf32>
    %258 = arith.addf %252, %257 : vector<8x256xf32>
    %c3_77 = arith.constant 3 : index
    %c5_78 = arith.constant 5 : index
    %259 = memref.load %arg2[%c3_77, %c5_78] : memref<4x12xf32, #tpu.memory_space<smem>>
    %260 = vector.extract_strided_slice %2 {offsets = [1, 0, 0], sizes = [1, 8, 256], strides = [1, 1, 1]} : vector<4x8x256xf32> to vector<1x8x256xf32>
    %261 = vector.shape_cast %260 : vector<1x8x256xf32> to vector<8x256xf32>
    %262 = vector.broadcast %259 : f32 to vector<8x256xf32>
    %263 = arith.mulf %262, %261 : vector<8x256xf32>
    %264 = arith.addf %258, %263 : vector<8x256xf32>
    %c3_79 = arith.constant 3 : index
    %c6_80 = arith.constant 6 : index
    %265 = memref.load %arg2[%c3_79, %c6_80] : memref<4x12xf32, #tpu.memory_space<smem>>
    %266 = vector.extract_strided_slice %2 {offsets = [2, 0, 0], sizes = [1, 8, 256], strides = [1, 1, 1]} : vector<4x8x256xf32> to vector<1x8x256xf32>
    %267 = vector.shape_cast %266 : vector<1x8x256xf32> to vector<8x256xf32>
    %268 = vector.broadcast %265 : f32 to vector<8x256xf32>
    %269 = arith.mulf %268, %267 : vector<8x256xf32>
    %270 = arith.addf %264, %269 : vector<8x256xf32>
    %c3_81 = arith.constant 3 : index
    %c7_82 = arith.constant 7 : index
    %271 = memref.load %arg2[%c3_81, %c7_82] : memref<4x12xf32, #tpu.memory_space<smem>>
    %272 = vector.extract_strided_slice %2 {offsets = [3, 0, 0], sizes = [1, 8, 256], strides = [1, 1, 1]} : vector<4x8x256xf32> to vector<1x8x256xf32>
    %273 = vector.shape_cast %272 : vector<1x8x256xf32> to vector<8x256xf32>
    %274 = vector.broadcast %271 : f32 to vector<8x256xf32>
    %275 = arith.mulf %274, %273 : vector<8x256xf32>
    %276 = arith.addf %270, %275 : vector<8x256xf32>
    %c3_83 = arith.constant 3 : index
    %c8_84 = arith.constant 8 : index
    %277 = memref.load %arg2[%c3_83, %c8_84] : memref<4x12xf32, #tpu.memory_space<smem>>
    %278 = vector.extract_strided_slice %7 {offsets = [0, 0, 0], sizes = [1, 8, 256], strides = [1, 1, 1]} : vector<4x8x256xf32> to vector<1x8x256xf32>
    %279 = vector.shape_cast %278 : vector<1x8x256xf32> to vector<8x256xf32>
    %280 = vector.broadcast %277 : f32 to vector<8x256xf32>
    %281 = arith.mulf %280, %279 : vector<8x256xf32>
    %282 = arith.addf %276, %281 : vector<8x256xf32>
    %c3_85 = arith.constant 3 : index
    %c9_86 = arith.constant 9 : index
    %283 = memref.load %arg2[%c3_85, %c9_86] : memref<4x12xf32, #tpu.memory_space<smem>>
    %284 = vector.extract_strided_slice %7 {offsets = [1, 0, 0], sizes = [1, 8, 256], strides = [1, 1, 1]} : vector<4x8x256xf32> to vector<1x8x256xf32>
    %285 = vector.shape_cast %284 : vector<1x8x256xf32> to vector<8x256xf32>
    %286 = vector.broadcast %283 : f32 to vector<8x256xf32>
    %287 = arith.mulf %286, %285 : vector<8x256xf32>
    %288 = arith.addf %282, %287 : vector<8x256xf32>
    %c3_87 = arith.constant 3 : index
    %c10_88 = arith.constant 10 : index
    %289 = memref.load %arg2[%c3_87, %c10_88] : memref<4x12xf32, #tpu.memory_space<smem>>
    %290 = vector.extract_strided_slice %7 {offsets = [2, 0, 0], sizes = [1, 8, 256], strides = [1, 1, 1]} : vector<4x8x256xf32> to vector<1x8x256xf32>
    %291 = vector.shape_cast %290 : vector<1x8x256xf32> to vector<8x256xf32>
    %292 = vector.broadcast %289 : f32 to vector<8x256xf32>
    %293 = arith.mulf %292, %291 : vector<8x256xf32>
    %294 = arith.addf %288, %293 : vector<8x256xf32>
    %c3_89 = arith.constant 3 : index
    %c11_90 = arith.constant 11 : index
    %295 = memref.load %arg2[%c3_89, %c11_90] : memref<4x12xf32, #tpu.memory_space<smem>>
    %296 = vector.extract_strided_slice %7 {offsets = [3, 0, 0], sizes = [1, 8, 256], strides = [1, 1, 1]} : vector<4x8x256xf32> to vector<1x8x256xf32>
    %297 = vector.shape_cast %296 : vector<1x8x256xf32> to vector<8x256xf32>
    %298 = vector.broadcast %295 : f32 to vector<8x256xf32>
    %299 = arith.mulf %298, %297 : vector<8x256xf32>
    %300 = arith.addf %294, %299 : vector<8x256xf32>
    %c3_91 = arith.constant 3 : index
    %301 = memref.load %arg3[%c3_91] : memref<4xf32, #tpu.memory_space<smem>>
    %302 = vector.broadcast %301 : f32 to vector<8x256xf32>
    %303 = arith.addf %300, %302 : vector<8x256xf32>
    %304 = vector.shape_cast %81 : vector<8x256xf32> to vector<1x8x256xf32>
    %305 = vector.shape_cast %155 : vector<8x256xf32> to vector<1x8x256xf32>
    %306 = vector.shape_cast %229 : vector<8x256xf32> to vector<1x8x256xf32>
    %307 = vector.shape_cast %303 : vector<8x256xf32> to vector<1x8x256xf32>
    %308 = tpu.concatenate %304, %305, %306, %307 in 0 : vector<1x8x256xf32>, vector<1x8x256xf32>, vector<1x8x256xf32>, vector<1x8x256xf32> -> vector<4x8x256xf32>
    %cst_92 = arith.constant 0.000000e+00 : f32
    %309 = vector.broadcast %cst_92 : f32 to vector<4x1x256xf32>
    %310 = vector.extract_strided_slice %308 {offsets = [0, 0, 0], sizes = [4, 7, 256], strides = [1, 1, 1]} : vector<4x8x256xf32> to vector<4x7x256xf32>
    %311 = tpu.concatenate %309, %310 in 1 : vector<4x1x256xf32>, vector<4x7x256xf32> -> vector<4x8x256xf32>
    %312 = vector.extract_strided_slice %308 {offsets = [0, 1, 0], sizes = [4, 7, 256], strides = [1, 1, 1]} : vector<4x8x256xf32> to vector<4x7x256xf32>
    %313 = tpu.concatenate %312, %309 in 1 : vector<4x7x256xf32>, vector<4x1x256xf32> -> vector<4x8x256xf32>
    %314 = vector.extract_strided_slice %308 {offsets = [0, 0, 0], sizes = [1, 8, 256], strides = [1, 1, 1]} : vector<4x8x256xf32> to vector<1x8x256xf32>
    %315 = vector.shape_cast %314 : vector<1x8x256xf32> to vector<8x256xf32>
    %c0_93 = arith.constant 0 : index
    %c0_94 = arith.constant 0 : index
    %316 = memref.load %arg4[%c0_93, %c0_94] : memref<4x12xf32, #tpu.memory_space<smem>>
    %317 = vector.extract_strided_slice %311 {offsets = [0, 0, 0], sizes = [1, 8, 256], strides = [1, 1, 1]} : vector<4x8x256xf32> to vector<1x8x256xf32>
    %318 = vector.shape_cast %317 : vector<1x8x256xf32> to vector<8x256xf32>
    %319 = vector.broadcast %316 : f32 to vector<8x256xf32>
    %320 = arith.mulf %319, %318 : vector<8x256xf32>
    %c0_95 = arith.constant 0 : index
    %c1_96 = arith.constant 1 : index
    %321 = memref.load %arg4[%c0_95, %c1_96] : memref<4x12xf32, #tpu.memory_space<smem>>
    %322 = vector.extract_strided_slice %311 {offsets = [1, 0, 0], sizes = [1, 8, 256], strides = [1, 1, 1]} : vector<4x8x256xf32> to vector<1x8x256xf32>
    %323 = vector.shape_cast %322 : vector<1x8x256xf32> to vector<8x256xf32>
    %324 = vector.broadcast %321 : f32 to vector<8x256xf32>
    %325 = arith.mulf %324, %323 : vector<8x256xf32>
    %326 = arith.addf %320, %325 : vector<8x256xf32>
    %c0_97 = arith.constant 0 : index
    %c2_98 = arith.constant 2 : index
    %327 = memref.load %arg4[%c0_97, %c2_98] : memref<4x12xf32, #tpu.memory_space<smem>>
    %328 = vector.extract_strided_slice %311 {offsets = [2, 0, 0], sizes = [1, 8, 256], strides = [1, 1, 1]} : vector<4x8x256xf32> to vector<1x8x256xf32>
    %329 = vector.shape_cast %328 : vector<1x8x256xf32> to vector<8x256xf32>
    %330 = vector.broadcast %327 : f32 to vector<8x256xf32>
    %331 = arith.mulf %330, %329 : vector<8x256xf32>
    %332 = arith.addf %326, %331 : vector<8x256xf32>
    %c0_99 = arith.constant 0 : index
    %c3_100 = arith.constant 3 : index
    %333 = memref.load %arg4[%c0_99, %c3_100] : memref<4x12xf32, #tpu.memory_space<smem>>
    %334 = vector.extract_strided_slice %311 {offsets = [3, 0, 0], sizes = [1, 8, 256], strides = [1, 1, 1]} : vector<4x8x256xf32> to vector<1x8x256xf32>
    %335 = vector.shape_cast %334 : vector<1x8x256xf32> to vector<8x256xf32>
    %336 = vector.broadcast %333 : f32 to vector<8x256xf32>
    %337 = arith.mulf %336, %335 : vector<8x256xf32>
    %338 = arith.addf %332, %337 : vector<8x256xf32>
    %c0_101 = arith.constant 0 : index
    %c4_102 = arith.constant 4 : index
    %339 = memref.load %arg4[%c0_101, %c4_102] : memref<4x12xf32, #tpu.memory_space<smem>>
    %340 = vector.extract_strided_slice %308 {offsets = [0, 0, 0], sizes = [1, 8, 256], strides = [1, 1, 1]} : vector<4x8x256xf32> to vector<1x8x256xf32>
    %341 = vector.shape_cast %340 : vector<1x8x256xf32> to vector<8x256xf32>
    %342 = vector.broadcast %339 : f32 to vector<8x256xf32>
    %343 = arith.mulf %342, %341 : vector<8x256xf32>
    %344 = arith.addf %338, %343 : vector<8x256xf32>
    %c0_103 = arith.constant 0 : index
    %c5_104 = arith.constant 5 : index
    %345 = memref.load %arg4[%c0_103, %c5_104] : memref<4x12xf32, #tpu.memory_space<smem>>
    %346 = vector.extract_strided_slice %308 {offsets = [1, 0, 0], sizes = [1, 8, 256], strides = [1, 1, 1]} : vector<4x8x256xf32> to vector<1x8x256xf32>
    %347 = vector.shape_cast %346 : vector<1x8x256xf32> to vector<8x256xf32>
    %348 = vector.broadcast %345 : f32 to vector<8x256xf32>
    %349 = arith.mulf %348, %347 : vector<8x256xf32>
    %350 = arith.addf %344, %349 : vector<8x256xf32>
    %c0_105 = arith.constant 0 : index
    %c6_106 = arith.constant 6 : index
    %351 = memref.load %arg4[%c0_105, %c6_106] : memref<4x12xf32, #tpu.memory_space<smem>>
    %352 = vector.extract_strided_slice %308 {offsets = [2, 0, 0], sizes = [1, 8, 256], strides = [1, 1, 1]} : vector<4x8x256xf32> to vector<1x8x256xf32>
    %353 = vector.shape_cast %352 : vector<1x8x256xf32> to vector<8x256xf32>
    %354 = vector.broadcast %351 : f32 to vector<8x256xf32>
    %355 = arith.mulf %354, %353 : vector<8x256xf32>
    %356 = arith.addf %350, %355 : vector<8x256xf32>
    %c0_107 = arith.constant 0 : index
    %c7_108 = arith.constant 7 : index
    %357 = memref.load %arg4[%c0_107, %c7_108] : memref<4x12xf32, #tpu.memory_space<smem>>
    %358 = vector.extract_strided_slice %308 {offsets = [3, 0, 0], sizes = [1, 8, 256], strides = [1, 1, 1]} : vector<4x8x256xf32> to vector<1x8x256xf32>
    %359 = vector.shape_cast %358 : vector<1x8x256xf32> to vector<8x256xf32>
    %360 = vector.broadcast %357 : f32 to vector<8x256xf32>
    %361 = arith.mulf %360, %359 : vector<8x256xf32>
    %362 = arith.addf %356, %361 : vector<8x256xf32>
    %c0_109 = arith.constant 0 : index
    %c8_110 = arith.constant 8 : index
    %363 = memref.load %arg4[%c0_109, %c8_110] : memref<4x12xf32, #tpu.memory_space<smem>>
    %364 = vector.extract_strided_slice %313 {offsets = [0, 0, 0], sizes = [1, 8, 256], strides = [1, 1, 1]} : vector<4x8x256xf32> to vector<1x8x256xf32>
    %365 = vector.shape_cast %364 : vector<1x8x256xf32> to vector<8x256xf32>
    %366 = vector.broadcast %363 : f32 to vector<8x256xf32>
    %367 = arith.mulf %366, %365 : vector<8x256xf32>
    %368 = arith.addf %362, %367 : vector<8x256xf32>
    %c0_111 = arith.constant 0 : index
    %c9_112 = arith.constant 9 : index
    %369 = memref.load %arg4[%c0_111, %c9_112] : memref<4x12xf32, #tpu.memory_space<smem>>
    %370 = vector.extract_strided_slice %313 {offsets = [1, 0, 0], sizes = [1, 8, 256], strides = [1, 1, 1]} : vector<4x8x256xf32> to vector<1x8x256xf32>
    %371 = vector.shape_cast %370 : vector<1x8x256xf32> to vector<8x256xf32>
    %372 = vector.broadcast %369 : f32 to vector<8x256xf32>
    %373 = arith.mulf %372, %371 : vector<8x256xf32>
    %374 = arith.addf %368, %373 : vector<8x256xf32>
    %c0_113 = arith.constant 0 : index
    %c10_114 = arith.constant 10 : index
    %375 = memref.load %arg4[%c0_113, %c10_114] : memref<4x12xf32, #tpu.memory_space<smem>>
    %376 = vector.extract_strided_slice %313 {offsets = [2, 0, 0], sizes = [1, 8, 256], strides = [1, 1, 1]} : vector<4x8x256xf32> to vector<1x8x256xf32>
    %377 = vector.shape_cast %376 : vector<1x8x256xf32> to vector<8x256xf32>
    %378 = vector.broadcast %375 : f32 to vector<8x256xf32>
    %379 = arith.mulf %378, %377 : vector<8x256xf32>
    %380 = arith.addf %374, %379 : vector<8x256xf32>
    %c0_115 = arith.constant 0 : index
    %c11_116 = arith.constant 11 : index
    %381 = memref.load %arg4[%c0_115, %c11_116] : memref<4x12xf32, #tpu.memory_space<smem>>
    %382 = vector.extract_strided_slice %313 {offsets = [3, 0, 0], sizes = [1, 8, 256], strides = [1, 1, 1]} : vector<4x8x256xf32> to vector<1x8x256xf32>
    %383 = vector.shape_cast %382 : vector<1x8x256xf32> to vector<8x256xf32>
    %384 = vector.broadcast %381 : f32 to vector<8x256xf32>
    %385 = arith.mulf %384, %383 : vector<8x256xf32>
    %386 = arith.addf %380, %385 : vector<8x256xf32>
    %c0_117 = arith.constant 0 : index
    %387 = memref.load %arg5[%c0_117] : memref<4xf32, #tpu.memory_space<smem>>
    %388 = vector.broadcast %387 : f32 to vector<8x256xf32>
    %389 = arith.addf %386, %388 : vector<8x256xf32>
    %390 = arith.addf %315, %389 : vector<8x256xf32>
    %391 = arith.negf %390 : vector<8x256xf32>
    %392 = math.exp %391 : vector<8x256xf32>
    %cst_118 = arith.constant 1.000000e+00 : f32
    %393 = vector.broadcast %cst_118 : f32 to vector<8x256xf32>
    %394 = arith.addf %393, %392 : vector<8x256xf32>
    %395 = arith.divf %393, %394 : vector<8x256xf32>
    %396 = vector.extract_strided_slice %2 {offsets = [0, 0, 0], sizes = [1, 8, 256], strides = [1, 1, 1]} : vector<4x8x256xf32> to vector<1x8x256xf32>
    %397 = vector.shape_cast %396 : vector<1x8x256xf32> to vector<8x256xf32>
    %398 = arith.mulf %395, %397 : vector<8x256xf32>
    %c0_119 = arith.constant 0 : index
    %c0_120 = arith.constant 0 : index
    %c0_121 = arith.constant 0 : index
    %c0_122 = arith.constant 0 : index
    %399 = vector.load %arg7[%c0_119, %c0_120, %c0_121, %c0_122] : memref<1x4x8x256xf32, #tpu.memory_space<vmem>>, vector<1x1x8x256xf32>
    %400 = vector.shape_cast %399 : vector<1x1x8x256xf32> to vector<8x256xf32>
    %401 = vector.shape_cast %398 : vector<8x256xf32> to vector<1x1x8x256xf32>
    tpu.vector_store %arg7[%c0_119, %c0_120, %c0_121, %c0_122], %401 {strides = array<i32>} : memref<1x4x8x256xf32, #tpu.memory_space<vmem>>, vector<1x1x8x256xf32>,
    %402 = vector.extract_strided_slice %308 {offsets = [1, 0, 0], sizes = [1, 8, 256], strides = [1, 1, 1]} : vector<4x8x256xf32> to vector<1x8x256xf32>
    %403 = vector.shape_cast %402 : vector<1x8x256xf32> to vector<8x256xf32>
    %c1_123 = arith.constant 1 : index
    %c0_124 = arith.constant 0 : index
    %404 = memref.load %arg4[%c1_123, %c0_124] : memref<4x12xf32, #tpu.memory_space<smem>>
    %405 = vector.extract_strided_slice %311 {offsets = [0, 0, 0], sizes = [1, 8, 256], strides = [1, 1, 1]} : vector<4x8x256xf32> to vector<1x8x256xf32>
    %406 = vector.shape_cast %405 : vector<1x8x256xf32> to vector<8x256xf32>
    %407 = vector.broadcast %404 : f32 to vector<8x256xf32>
    %408 = arith.mulf %407, %406 : vector<8x256xf32>
    %c1_125 = arith.constant 1 : index
    %c1_126 = arith.constant 1 : index
    %409 = memref.load %arg4[%c1_125, %c1_126] : memref<4x12xf32, #tpu.memory_space<smem>>
    %410 = vector.extract_strided_slice %311 {offsets = [1, 0, 0], sizes = [1, 8, 256], strides = [1, 1, 1]} : vector<4x8x256xf32> to vector<1x8x256xf32>
    %411 = vector.shape_cast %410 : vector<1x8x256xf32> to vector<8x256xf32>
    %412 = vector.broadcast %409 : f32 to vector<8x256xf32>
    %413 = arith.mulf %412, %411 : vector<8x256xf32>
    %414 = arith.addf %408, %413 : vector<8x256xf32>
    %c1_127 = arith.constant 1 : index
    %c2_128 = arith.constant 2 : index
    %415 = memref.load %arg4[%c1_127, %c2_128] : memref<4x12xf32, #tpu.memory_space<smem>>
    %416 = vector.extract_strided_slice %311 {offsets = [2, 0, 0], sizes = [1, 8, 256], strides = [1, 1, 1]} : vector<4x8x256xf32> to vector<1x8x256xf32>
    %417 = vector.shape_cast %416 : vector<1x8x256xf32> to vector<8x256xf32>
    %418 = vector.broadcast %415 : f32 to vector<8x256xf32>
    %419 = arith.mulf %418, %417 : vector<8x256xf32>
    %420 = arith.addf %414, %419 : vector<8x256xf32>
    %c1_129 = arith.constant 1 : index
    %c3_130 = arith.constant 3 : index
    %421 = memref.load %arg4[%c1_129, %c3_130] : memref<4x12xf32, #tpu.memory_space<smem>>
    %422 = vector.extract_strided_slice %311 {offsets = [3, 0, 0], sizes = [1, 8, 256], strides = [1, 1, 1]} : vector<4x8x256xf32> to vector<1x8x256xf32>
    %423 = vector.shape_cast %422 : vector<1x8x256xf32> to vector<8x256xf32>
    %424 = vector.broadcast %421 : f32 to vector<8x256xf32>
    %425 = arith.mulf %424, %423 : vector<8x256xf32>
    %426 = arith.addf %420, %425 : vector<8x256xf32>
    %c1_131 = arith.constant 1 : index
    %c4_132 = arith.constant 4 : index
    %427 = memref.load %arg4[%c1_131, %c4_132] : memref<4x12xf32, #tpu.memory_space<smem>>
    %428 = vector.extract_strided_slice %308 {offsets = [0, 0, 0], sizes = [1, 8, 256], strides = [1, 1, 1]} : vector<4x8x256xf32> to vector<1x8x256xf32>
    %429 = vector.shape_cast %428 : vector<1x8x256xf32> to vector<8x256xf32>
    %430 = vector.broadcast %427 : f32 to vector<8x256xf32>
    %431 = arith.mulf %430, %429 : vector<8x256xf32>
    %432 = arith.addf %426, %431 : vector<8x256xf32>
    %c1_133 = arith.constant 1 : index
    %c5_134 = arith.constant 5 : index
    %433 = memref.load %arg4[%c1_133, %c5_134] : memref<4x12xf32, #tpu.memory_space<smem>>
    %434 = vector.extract_strided_slice %308 {offsets = [1, 0, 0], sizes = [1, 8, 256], strides = [1, 1, 1]} : vector<4x8x256xf32> to vector<1x8x256xf32>
    %435 = vector.shape_cast %434 : vector<1x8x256xf32> to vector<8x256xf32>
    %436 = vector.broadcast %433 : f32 to vector<8x256xf32>
    %437 = arith.mulf %436, %435 : vector<8x256xf32>
    %438 = arith.addf %432, %437 : vector<8x256xf32>
    %c1_135 = arith.constant 1 : index
    %c6_136 = arith.constant 6 : index
    %439 = memref.load %arg4[%c1_135, %c6_136] : memref<4x12xf32, #tpu.memory_space<smem>>
    %440 = vector.extract_strided_slice %308 {offsets = [2, 0, 0], sizes = [1, 8, 256], strides = [1, 1, 1]} : vector<4x8x256xf32> to vector<1x8x256xf32>
    %441 = vector.shape_cast %440 : vector<1x8x256xf32> to vector<8x256xf32>
    %442 = vector.broadcast %439 : f32 to vector<8x256xf32>
    %443 = arith.mulf %442, %441 : vector<8x256xf32>
    %444 = arith.addf %438, %443 : vector<8x256xf32>
    %c1_137 = arith.constant 1 : index
    %c7_138 = arith.constant 7 : index
    %445 = memref.load %arg4[%c1_137, %c7_138] : memref<4x12xf32, #tpu.memory_space<smem>>
    %446 = vector.extract_strided_slice %308 {offsets = [3, 0, 0], sizes = [1, 8, 256], strides = [1, 1, 1]} : vector<4x8x256xf32> to vector<1x8x256xf32>
    %447 = vector.shape_cast %446 : vector<1x8x256xf32> to vector<8x256xf32>
    %448 = vector.broadcast %445 : f32 to vector<8x256xf32>
    %449 = arith.mulf %448, %447 : vector<8x256xf32>
    %450 = arith.addf %444, %449 : vector<8x256xf32>
    %c1_139 = arith.constant 1 : index
    %c8_140 = arith.constant 8 : index
    %451 = memref.load %arg4[%c1_139, %c8_140] : memref<4x12xf32, #tpu.memory_space<smem>>
    %452 = vector.extract_strided_slice %313 {offsets = [0, 0, 0], sizes = [1, 8, 256], strides = [1, 1, 1]} : vector<4x8x256xf32> to vector<1x8x256xf32>
    %453 = vector.shape_cast %452 : vector<1x8x256xf32> to vector<8x256xf32>
    %454 = vector.broadcast %451 : f32 to vector<8x256xf32>
    %455 = arith.mulf %454, %453 : vector<8x256xf32>
    %456 = arith.addf %450, %455 : vector<8x256xf32>
    %c1_141 = arith.constant 1 : index
    %c9_142 = arith.constant 9 : index
    %457 = memref.load %arg4[%c1_141, %c9_142] : memref<4x12xf32, #tpu.memory_space<smem>>
    %458 = vector.extract_strided_slice %313 {offsets = [1, 0, 0], sizes = [1, 8, 256], strides = [1, 1, 1]} : vector<4x8x256xf32> to vector<1x8x256xf32>
    %459 = vector.shape_cast %458 : vector<1x8x256xf32> to vector<8x256xf32>
    %460 = vector.broadcast %457 : f32 to vector<8x256xf32>
    %461 = arith.mulf %460, %459 : vector<8x256xf32>
    %462 = arith.addf %456, %461 : vector<8x256xf32>
    %c1_143 = arith.constant 1 : index
    %c10_144 = arith.constant 10 : index
    %463 = memref.load %arg4[%c1_143, %c10_144] : memref<4x12xf32, #tpu.memory_space<smem>>
    %464 = vector.extract_strided_slice %313 {offsets = [2, 0, 0], sizes = [1, 8, 256], strides = [1, 1, 1]} : vector<4x8x256xf32> to vector<1x8x256xf32>
    %465 = vector.shape_cast %464 : vector<1x8x256xf32> to vector<8x256xf32>
    %466 = vector.broadcast %463 : f32 to vector<8x256xf32>
    %467 = arith.mulf %466, %465 : vector<8x256xf32>
    %468 = arith.addf %462, %467 : vector<8x256xf32>
    %c1_145 = arith.constant 1 : index
    %c11_146 = arith.constant 11 : index
    %469 = memref.load %arg4[%c1_145, %c11_146] : memref<4x12xf32, #tpu.memory_space<smem>>
    %470 = vector.extract_strided_slice %313 {offsets = [3, 0, 0], sizes = [1, 8, 256], strides = [1, 1, 1]} : vector<4x8x256xf32> to vector<1x8x256xf32>
    %471 = vector.shape_cast %470 : vector<1x8x256xf32> to vector<8x256xf32>
    %472 = vector.broadcast %469 : f32 to vector<8x256xf32>
    %473 = arith.mulf %472, %471 : vector<8x256xf32>
    %474 = arith.addf %468, %473 : vector<8x256xf32>
    %c1_147 = arith.constant 1 : index
    %475 = memref.load %arg5[%c1_147] : memref<4xf32, #tpu.memory_space<smem>>
    %476 = vector.broadcast %475 : f32 to vector<8x256xf32>
    %477 = arith.addf %474, %476 : vector<8x256xf32>
    %478 = arith.addf %403, %477 : vector<8x256xf32>
    %479 = arith.negf %478 : vector<8x256xf32>
    %480 = math.exp %479 : vector<8x256xf32>
    %cst_148 = arith.constant 1.000000e+00 : f32
    %481 = vector.broadcast %cst_148 : f32 to vector<8x256xf32>
    %482 = arith.addf %481, %480 : vector<8x256xf32>
    %483 = arith.divf %481, %482 : vector<8x256xf32>
    %484 = vector.extract_strided_slice %2 {offsets = [1, 0, 0], sizes = [1, 8, 256], strides = [1, 1, 1]} : vector<4x8x256xf32> to vector<1x8x256xf32>
    %485 = vector.shape_cast %484 : vector<1x8x256xf32> to vector<8x256xf32>
    %486 = arith.mulf %483, %485 : vector<8x256xf32>
    %c0_149 = arith.constant 0 : index
    %c1_150 = arith.constant 1 : index
    %c0_151 = arith.constant 0 : index
    %c0_152 = arith.constant 0 : index
    %487 = vector.load %arg7[%c0_149, %c1_150, %c0_151, %c0_152] : memref<1x4x8x256xf32, #tpu.memory_space<vmem>>, vector<1x1x8x256xf32>
    %488 = vector.shape_cast %487 : vector<1x1x8x256xf32> to vector<8x256xf32>
    %489 = vector.shape_cast %486 : vector<8x256xf32> to vector<1x1x8x256xf32>
    tpu.vector_store %arg7[%c0_149, %c1_150, %c0_151, %c0_152], %489 {strides = array<i32>} : memref<1x4x8x256xf32, #tpu.memory_space<vmem>>, vector<1x1x8x256xf32>,
    %490 = vector.extract_strided_slice %308 {offsets = [2, 0, 0], sizes = [1, 8, 256], strides = [1, 1, 1]} : vector<4x8x256xf32> to vector<1x8x256xf32>
    %491 = vector.shape_cast %490 : vector<1x8x256xf32> to vector<8x256xf32>
    %c2_153 = arith.constant 2 : index
    %c0_154 = arith.constant 0 : index
    %492 = memref.load %arg4[%c2_153, %c0_154] : memref<4x12xf32, #tpu.memory_space<smem>>
    %493 = vector.extract_strided_slice %311 {offsets = [0, 0, 0], sizes = [1, 8, 256], strides = [1, 1, 1]} : vector<4x8x256xf32> to vector<1x8x256xf32>
    %494 = vector.shape_cast %493 : vector<1x8x256xf32> to vector<8x256xf32>
    %495 = vector.broadcast %492 : f32 to vector<8x256xf32>
    %496 = arith.mulf %495, %494 : vector<8x256xf32>
    %c2_155 = arith.constant 2 : index
    %c1_156 = arith.constant 1 : index
    %497 = memref.load %arg4[%c2_155, %c1_156] : memref<4x12xf32, #tpu.memory_space<smem>>
    %498 = vector.extract_strided_slice %311 {offsets = [1, 0, 0], sizes = [1, 8, 256], strides = [1, 1, 1]} : vector<4x8x256xf32> to vector<1x8x256xf32>
    %499 = vector.shape_cast %498 : vector<1x8x256xf32> to vector<8x256xf32>
    %500 = vector.broadcast %497 : f32 to vector<8x256xf32>
    %501 = arith.mulf %500, %499 : vector<8x256xf32>
    %502 = arith.addf %496, %501 : vector<8x256xf32>
    %c2_157 = arith.constant 2 : index
    %c2_158 = arith.constant 2 : index
    %503 = memref.load %arg4[%c2_157, %c2_158] : memref<4x12xf32, #tpu.memory_space<smem>>
    %504 = vector.extract_strided_slice %311 {offsets = [2, 0, 0], sizes = [1, 8, 256], strides = [1, 1, 1]} : vector<4x8x256xf32> to vector<1x8x256xf32>
    %505 = vector.shape_cast %504 : vector<1x8x256xf32> to vector<8x256xf32>
    %506 = vector.broadcast %503 : f32 to vector<8x256xf32>
    %507 = arith.mulf %506, %505 : vector<8x256xf32>
    %508 = arith.addf %502, %507 : vector<8x256xf32>
    %c2_159 = arith.constant 2 : index
    %c3_160 = arith.constant 3 : index
    %509 = memref.load %arg4[%c2_159, %c3_160] : memref<4x12xf32, #tpu.memory_space<smem>>
    %510 = vector.extract_strided_slice %311 {offsets = [3, 0, 0], sizes = [1, 8, 256], strides = [1, 1, 1]} : vector<4x8x256xf32> to vector<1x8x256xf32>
    %511 = vector.shape_cast %510 : vector<1x8x256xf32> to vector<8x256xf32>
    %512 = vector.broadcast %509 : f32 to vector<8x256xf32>
    %513 = arith.mulf %512, %511 : vector<8x256xf32>
    %514 = arith.addf %508, %513 : vector<8x256xf32>
    %c2_161 = arith.constant 2 : index
    %c4_162 = arith.constant 4 : index
    %515 = memref.load %arg4[%c2_161, %c4_162] : memref<4x12xf32, #tpu.memory_space<smem>>
    %516 = vector.extract_strided_slice %308 {offsets = [0, 0, 0], sizes = [1, 8, 256], strides = [1, 1, 1]} : vector<4x8x256xf32> to vector<1x8x256xf32>
    %517 = vector.shape_cast %516 : vector<1x8x256xf32> to vector<8x256xf32>
    %518 = vector.broadcast %515 : f32 to vector<8x256xf32>
    %519 = arith.mulf %518, %517 : vector<8x256xf32>
    %520 = arith.addf %514, %519 : vector<8x256xf32>
    %c2_163 = arith.constant 2 : index
    %c5_164 = arith.constant 5 : index
    %521 = memref.load %arg4[%c2_163, %c5_164] : memref<4x12xf32, #tpu.memory_space<smem>>
    %522 = vector.extract_strided_slice %308 {offsets = [1, 0, 0], sizes = [1, 8, 256], strides = [1, 1, 1]} : vector<4x8x256xf32> to vector<1x8x256xf32>
    %523 = vector.shape_cast %522 : vector<1x8x256xf32> to vector<8x256xf32>
    %524 = vector.broadcast %521 : f32 to vector<8x256xf32>
    %525 = arith.mulf %524, %523 : vector<8x256xf32>
    %526 = arith.addf %520, %525 : vector<8x256xf32>
    %c2_165 = arith.constant 2 : index
    %c6_166 = arith.constant 6 : index
    %527 = memref.load %arg4[%c2_165, %c6_166] : memref<4x12xf32, #tpu.memory_space<smem>>
    %528 = vector.extract_strided_slice %308 {offsets = [2, 0, 0], sizes = [1, 8, 256], strides = [1, 1, 1]} : vector<4x8x256xf32> to vector<1x8x256xf32>
    %529 = vector.shape_cast %528 : vector<1x8x256xf32> to vector<8x256xf32>
    %530 = vector.broadcast %527 : f32 to vector<8x256xf32>
    %531 = arith.mulf %530, %529 : vector<8x256xf32>
    %532 = arith.addf %526, %531 : vector<8x256xf32>
    %c2_167 = arith.constant 2 : index
    %c7_168 = arith.constant 7 : index
    %533 = memref.load %arg4[%c2_167, %c7_168] : memref<4x12xf32, #tpu.memory_space<smem>>
    %534 = vector.extract_strided_slice %308 {offsets = [3, 0, 0], sizes = [1, 8, 256], strides = [1, 1, 1]} : vector<4x8x256xf32> to vector<1x8x256xf32>
    %535 = vector.shape_cast %534 : vector<1x8x256xf32> to vector<8x256xf32>
    %536 = vector.broadcast %533 : f32 to vector<8x256xf32>
    %537 = arith.mulf %536, %535 : vector<8x256xf32>
    %538 = arith.addf %532, %537 : vector<8x256xf32>
    %c2_169 = arith.constant 2 : index
    %c8_170 = arith.constant 8 : index
    %539 = memref.load %arg4[%c2_169, %c8_170] : memref<4x12xf32, #tpu.memory_space<smem>>
    %540 = vector.extract_strided_slice %313 {offsets = [0, 0, 0], sizes = [1, 8, 256], strides = [1, 1, 1]} : vector<4x8x256xf32> to vector<1x8x256xf32>
    %541 = vector.shape_cast %540 : vector<1x8x256xf32> to vector<8x256xf32>
    %542 = vector.broadcast %539 : f32 to vector<8x256xf32>
    %543 = arith.mulf %542, %541 : vector<8x256xf32>
    %544 = arith.addf %538, %543 : vector<8x256xf32>
    %c2_171 = arith.constant 2 : index
    %c9_172 = arith.constant 9 : index
    %545 = memref.load %arg4[%c2_171, %c9_172] : memref<4x12xf32, #tpu.memory_space<smem>>
    %546 = vector.extract_strided_slice %313 {offsets = [1, 0, 0], sizes = [1, 8, 256], strides = [1, 1, 1]} : vector<4x8x256xf32> to vector<1x8x256xf32>
    %547 = vector.shape_cast %546 : vector<1x8x256xf32> to vector<8x256xf32>
    %548 = vector.broadcast %545 : f32 to vector<8x256xf32>
    %549 = arith.mulf %548, %547 : vector<8x256xf32>
    %550 = arith.addf %544, %549 : vector<8x256xf32>
    %c2_173 = arith.constant 2 : index
    %c10_174 = arith.constant 10 : index
    %551 = memref.load %arg4[%c2_173, %c10_174] : memref<4x12xf32, #tpu.memory_space<smem>>
    %552 = vector.extract_strided_slice %313 {offsets = [2, 0, 0], sizes = [1, 8, 256], strides = [1, 1, 1]} : vector<4x8x256xf32> to vector<1x8x256xf32>
    %553 = vector.shape_cast %552 : vector<1x8x256xf32> to vector<8x256xf32>
    %554 = vector.broadcast %551 : f32 to vector<8x256xf32>
    %555 = arith.mulf %554, %553 : vector<8x256xf32>
    %556 = arith.addf %550, %555 : vector<8x256xf32>
    %c2_175 = arith.constant 2 : index
    %c11_176 = arith.constant 11 : index
    %557 = memref.load %arg4[%c2_175, %c11_176] : memref<4x12xf32, #tpu.memory_space<smem>>
    %558 = vector.extract_strided_slice %313 {offsets = [3, 0, 0], sizes = [1, 8, 256], strides = [1, 1, 1]} : vector<4x8x256xf32> to vector<1x8x256xf32>
    %559 = vector.shape_cast %558 : vector<1x8x256xf32> to vector<8x256xf32>
    %560 = vector.broadcast %557 : f32 to vector<8x256xf32>
    %561 = arith.mulf %560, %559 : vector<8x256xf32>
    %562 = arith.addf %556, %561 : vector<8x256xf32>
    %c2_177 = arith.constant 2 : index
    %563 = memref.load %arg5[%c2_177] : memref<4xf32, #tpu.memory_space<smem>>
    %564 = vector.broadcast %563 : f32 to vector<8x256xf32>
    %565 = arith.addf %562, %564 : vector<8x256xf32>
    %566 = arith.addf %491, %565 : vector<8x256xf32>
    %567 = arith.negf %566 : vector<8x256xf32>
    %568 = math.exp %567 : vector<8x256xf32>
    %cst_178 = arith.constant 1.000000e+00 : f32
    %569 = vector.broadcast %cst_178 : f32 to vector<8x256xf32>
    %570 = arith.addf %569, %568 : vector<8x256xf32>
    %571 = arith.divf %569, %570 : vector<8x256xf32>
    %572 = vector.extract_strided_slice %2 {offsets = [2, 0, 0], sizes = [1, 8, 256], strides = [1, 1, 1]} : vector<4x8x256xf32> to vector<1x8x256xf32>
    %573 = vector.shape_cast %572 : vector<1x8x256xf32> to vector<8x256xf32>
    %574 = arith.mulf %571, %573 : vector<8x256xf32>
    %c0_179 = arith.constant 0 : index
    %c2_180 = arith.constant 2 : index
    %c0_181 = arith.constant 0 : index
    %c0_182 = arith.constant 0 : index
    %575 = vector.load %arg7[%c0_179, %c2_180, %c0_181, %c0_182] : memref<1x4x8x256xf32, #tpu.memory_space<vmem>>, vector<1x1x8x256xf32>
    %576 = vector.shape_cast %575 : vector<1x1x8x256xf32> to vector<8x256xf32>
    %577 = vector.shape_cast %574 : vector<8x256xf32> to vector<1x1x8x256xf32>
    tpu.vector_store %arg7[%c0_179, %c2_180, %c0_181, %c0_182], %577 {strides = array<i32>} : memref<1x4x8x256xf32, #tpu.memory_space<vmem>>, vector<1x1x8x256xf32>,
    %578 = vector.extract_strided_slice %308 {offsets = [3, 0, 0], sizes = [1, 8, 256], strides = [1, 1, 1]} : vector<4x8x256xf32> to vector<1x8x256xf32>
    %579 = vector.shape_cast %578 : vector<1x8x256xf32> to vector<8x256xf32>
    %c3_183 = arith.constant 3 : index
    %c0_184 = arith.constant 0 : index
    %580 = memref.load %arg4[%c3_183, %c0_184] : memref<4x12xf32, #tpu.memory_space<smem>>
    %581 = vector.extract_strided_slice %311 {offsets = [0, 0, 0], sizes = [1, 8, 256], strides = [1, 1, 1]} : vector<4x8x256xf32> to vector<1x8x256xf32>
    %582 = vector.shape_cast %581 : vector<1x8x256xf32> to vector<8x256xf32>
    %583 = vector.broadcast %580 : f32 to vector<8x256xf32>
    %584 = arith.mulf %583, %582 : vector<8x256xf32>
    %c3_185 = arith.constant 3 : index
    %c1_186 = arith.constant 1 : index
    %585 = memref.load %arg4[%c3_185, %c1_186] : memref<4x12xf32, #tpu.memory_space<smem>>
    %586 = vector.extract_strided_slice %311 {offsets = [1, 0, 0], sizes = [1, 8, 256], strides = [1, 1, 1]} : vector<4x8x256xf32> to vector<1x8x256xf32>
    %587 = vector.shape_cast %586 : vector<1x8x256xf32> to vector<8x256xf32>
    %588 = vector.broadcast %585 : f32 to vector<8x256xf32>
    %589 = arith.mulf %588, %587 : vector<8x256xf32>
    %590 = arith.addf %584, %589 : vector<8x256xf32>
    %c3_187 = arith.constant 3 : index
    %c2_188 = arith.constant 2 : index
    %591 = memref.load %arg4[%c3_187, %c2_188] : memref<4x12xf32, #tpu.memory_space<smem>>
    %592 = vector.extract_strided_slice %311 {offsets = [2, 0, 0], sizes = [1, 8, 256], strides = [1, 1, 1]} : vector<4x8x256xf32> to vector<1x8x256xf32>
    %593 = vector.shape_cast %592 : vector<1x8x256xf32> to vector<8x256xf32>
    %594 = vector.broadcast %591 : f32 to vector<8x256xf32>
    %595 = arith.mulf %594, %593 : vector<8x256xf32>
    %596 = arith.addf %590, %595 : vector<8x256xf32>
    %c3_189 = arith.constant 3 : index
    %c3_190 = arith.constant 3 : index
    %597 = memref.load %arg4[%c3_189, %c3_190] : memref<4x12xf32, #tpu.memory_space<smem>>
    %598 = vector.extract_strided_slice %311 {offsets = [3, 0, 0], sizes = [1, 8, 256], strides = [1, 1, 1]} : vector<4x8x256xf32> to vector<1x8x256xf32>
    %599 = vector.shape_cast %598 : vector<1x8x256xf32> to vector<8x256xf32>
    %600 = vector.broadcast %597 : f32 to vector<8x256xf32>
    %601 = arith.mulf %600, %599 : vector<8x256xf32>
    %602 = arith.addf %596, %601 : vector<8x256xf32>
    %c3_191 = arith.constant 3 : index
    %c4_192 = arith.constant 4 : index
    %603 = memref.load %arg4[%c3_191, %c4_192] : memref<4x12xf32, #tpu.memory_space<smem>>
    %604 = vector.extract_strided_slice %308 {offsets = [0, 0, 0], sizes = [1, 8, 256], strides = [1, 1, 1]} : vector<4x8x256xf32> to vector<1x8x256xf32>
    %605 = vector.shape_cast %604 : vector<1x8x256xf32> to vector<8x256xf32>
    %606 = vector.broadcast %603 : f32 to vector<8x256xf32>
    %607 = arith.mulf %606, %605 : vector<8x256xf32>
    %608 = arith.addf %602, %607 : vector<8x256xf32>
    %c3_193 = arith.constant 3 : index
    %c5_194 = arith.constant 5 : index
    %609 = memref.load %arg4[%c3_193, %c5_194] : memref<4x12xf32, #tpu.memory_space<smem>>
    %610 = vector.extract_strided_slice %308 {offsets = [1, 0, 0], sizes = [1, 8, 256], strides = [1, 1, 1]} : vector<4x8x256xf32> to vector<1x8x256xf32>
    %611 = vector.shape_cast %610 : vector<1x8x256xf32> to vector<8x256xf32>
    %612 = vector.broadcast %609 : f32 to vector<8x256xf32>
    %613 = arith.mulf %612, %611 : vector<8x256xf32>
    %614 = arith.addf %608, %613 : vector<8x256xf32>
    %c3_195 = arith.constant 3 : index
    %c6_196 = arith.constant 6 : index
    %615 = memref.load %arg4[%c3_195, %c6_196] : memref<4x12xf32, #tpu.memory_space<smem>>
    %616 = vector.extract_strided_slice %308 {offsets = [2, 0, 0], sizes = [1, 8, 256], strides = [1, 1, 1]} : vector<4x8x256xf32> to vector<1x8x256xf32>
    %617 = vector.shape_cast %616 : vector<1x8x256xf32> to vector<8x256xf32>
    %618 = vector.broadcast %615 : f32 to vector<8x256xf32>
    %619 = arith.mulf %618, %617 : vector<8x256xf32>
    %620 = arith.addf %614, %619 : vector<8x256xf32>
    %c3_197 = arith.constant 3 : index
    %c7_198 = arith.constant 7 : index
    %621 = memref.load %arg4[%c3_197, %c7_198] : memref<4x12xf32, #tpu.memory_space<smem>>
    %622 = vector.extract_strided_slice %308 {offsets = [3, 0, 0], sizes = [1, 8, 256], strides = [1, 1, 1]} : vector<4x8x256xf32> to vector<1x8x256xf32>
    %623 = vector.shape_cast %622 : vector<1x8x256xf32> to vector<8x256xf32>
    %624 = vector.broadcast %621 : f32 to vector<8x256xf32>
    %625 = arith.mulf %624, %623 : vector<8x256xf32>
    %626 = arith.addf %620, %625 : vector<8x256xf32>
    %c3_199 = arith.constant 3 : index
    %c8_200 = arith.constant 8 : index
    %627 = memref.load %arg4[%c3_199, %c8_200] : memref<4x12xf32, #tpu.memory_space<smem>>
    %628 = vector.extract_strided_slice %313 {offsets = [0, 0, 0], sizes = [1, 8, 256], strides = [1, 1, 1]} : vector<4x8x256xf32> to vector<1x8x256xf32>
    %629 = vector.shape_cast %628 : vector<1x8x256xf32> to vector<8x256xf32>
    %630 = vector.broadcast %627 : f32 to vector<8x256xf32>
    %631 = arith.mulf %630, %629 : vector<8x256xf32>
    %632 = arith.addf %626, %631 : vector<8x256xf32>
    %c3_201 = arith.constant 3 : index
    %c9_202 = arith.constant 9 : index
    %633 = memref.load %arg4[%c3_201, %c9_202] : memref<4x12xf32, #tpu.memory_space<smem>>
    %634 = vector.extract_strided_slice %313 {offsets = [1, 0, 0], sizes = [1, 8, 256], strides = [1, 1, 1]} : vector<4x8x256xf32> to vector<1x8x256xf32>
    %635 = vector.shape_cast %634 : vector<1x8x256xf32> to vector<8x256xf32>
    %636 = vector.broadcast %633 : f32 to vector<8x256xf32>
    %637 = arith.mulf %636, %635 : vector<8x256xf32>
    %638 = arith.addf %632, %637 : vector<8x256xf32>
    %c3_203 = arith.constant 3 : index
    %c10_204 = arith.constant 10 : index
    %639 = memref.load %arg4[%c3_203, %c10_204] : memref<4x12xf32, #tpu.memory_space<smem>>
    %640 = vector.extract_strided_slice %313 {offsets = [2, 0, 0], sizes = [1, 8, 256], strides = [1, 1, 1]} : vector<4x8x256xf32> to vector<1x8x256xf32>
    %641 = vector.shape_cast %640 : vector<1x8x256xf32> to vector<8x256xf32>
    %642 = vector.broadcast %639 : f32 to vector<8x256xf32>
    %643 = arith.mulf %642, %641 : vector<8x256xf32>
    %644 = arith.addf %638, %643 : vector<8x256xf32>
    %c3_205 = arith.constant 3 : index
    %c11_206 = arith.constant 11 : index
    %645 = memref.load %arg4[%c3_205, %c11_206] : memref<4x12xf32, #tpu.memory_space<smem>>
    %646 = vector.extract_strided_slice %313 {offsets = [3, 0, 0], sizes = [1, 8, 256], strides = [1, 1, 1]} : vector<4x8x256xf32> to vector<1x8x256xf32>
    %647 = vector.shape_cast %646 : vector<1x8x256xf32> to vector<8x256xf32>
    %648 = vector.broadcast %645 : f32 to vector<8x256xf32>
    %649 = arith.mulf %648, %647 : vector<8x256xf32>
    %650 = arith.addf %644, %649 : vector<8x256xf32>
    %c3_207 = arith.constant 3 : index
    %651 = memref.load %arg5[%c3_207] : memref<4xf32, #tpu.memory_space<smem>>
    %652 = vector.broadcast %651 : f32 to vector<8x256xf32>
    %653 = arith.addf %650, %652 : vector<8x256xf32>
    %654 = arith.addf %579, %653 : vector<8x256xf32>
    %655 = arith.negf %654 : vector<8x256xf32>
    %656 = math.exp %655 : vector<8x256xf32>
    %cst_208 = arith.constant 1.000000e+00 : f32
    %657 = vector.broadcast %cst_208 : f32 to vector<8x256xf32>
    %658 = arith.addf %657, %656 : vector<8x256xf32>
    %659 = arith.divf %657, %658 : vector<8x256xf32>
    %660 = vector.extract_strided_slice %2 {offsets = [3, 0, 0], sizes = [1, 8, 256], strides = [1, 1, 1]} : vector<4x8x256xf32> to vector<1x8x256xf32>
    %661 = vector.shape_cast %660 : vector<1x8x256xf32> to vector<8x256xf32>
    %662 = arith.mulf %659, %661 : vector<8x256xf32>
    %c0_209 = arith.constant 0 : index
    %c3_210 = arith.constant 3 : index
    %c0_211 = arith.constant 0 : index
    %c0_212 = arith.constant 0 : index
    %663 = vector.load %arg7[%c0_209, %c3_210, %c0_211, %c0_212] : memref<1x4x8x256xf32, #tpu.memory_space<vmem>>, vector<1x1x8x256xf32>
    %664 = vector.shape_cast %663 : vector<1x1x8x256xf32> to vector<8x256xf32>
    %665 = vector.shape_cast %662 : vector<8x256xf32> to vector<1x1x8x256xf32>
    tpu.vector_store %arg7[%c0_209, %c3_210, %c0_211, %c0_212], %665 {strides = array<i32>} : memref<1x4x8x256xf32, #tpu.memory_space<vmem>>, vector<1x1x8x256xf32>,
    return
  }
  func.func @transform_0(%arg0: i32, %arg1: i32) -> (i32, i32) {
    %c0_i32 = arith.constant 0 : i32
    %c0_i32_0 = arith.constant 0 : i32
    %c0_i32_1 = arith.constant 0 : i32
    return %c0_i32, %c0_i32_0 : i32, i32
  }
  func.func @transform_1(%arg0: i32, %arg1: i32) -> i32 {
    %c0_i32 = arith.constant 0 : i32
    %c0_i32_0 = arith.constant 0 : i32
    return %c0_i32 : i32
  }
  func.func @transform_2(%arg0: i32, %arg1: i32) -> (i32, i32) {
    %c0_i32 = arith.constant 0 : i32
    %c0_i32_0 = arith.constant 0 : i32
    %c0_i32_1 = arith.constant 0 : i32
    return %c0_i32, %c0_i32_0 : i32, i32
  }
  func.func @transform_3(%arg0: i32, %arg1: i32) -> i32 {
    %c0_i32 = arith.constant 0 : i32
    %c0_i32_0 = arith.constant 0 : i32
    return %c0_i32 : i32
  }
  func.func @transform_4(%arg0: i32, %arg1: i32) -> (i32, i32, i32, i32) {
    %c0_i32 = arith.constant 0 : i32
    %c0_i32_0 = arith.constant 0 : i32
    %c0_i32_1 = arith.constant 0 : i32
    return %arg0, %c0_i32, %c0_i32_0, %arg1 : i32, i32, i32, i32
  }
  func.func @transform_5(%arg0: i32, %arg1: i32) -> (i32, i32, i32, i32) {
    %c0_i32 = arith.constant 0 : i32
    %c0_i32_0 = arith.constant 0 : i32
    %c0_i32_1 = arith.constant 0 : i32
    return %arg0, %c0_i32, %c0_i32_0, %arg1 : i32, i32, i32, i32
  }
}

</mosaic_0001>

<bundles_post_ra>
// kernel: short_term_temporal_feature_v2.1
= control target key start
LH: loop header
LB: loop body
LE: loop exit
PB: predicated region body
PF: predicated region fallthrough
CT: control target
= control target key end

     0   :  { %10 = vsyncpa [#allocation3], 0  ;;  %s2405_s0 = inlined_call_operand.vmem [shape: f32[4,12], index: 0, kind: input, shape index: {}]   ;;  %s2406_s1 = inlined_call_operand.vmem [shape: f32[4], index: 1, kind: input, shape index: {}]   ;;  %s2407_s2 = inlined_call_operand.vmem [shape: f32[4,12], index: 2, kind: input, shape index: {}]   ;;  %s2408_s3 = inlined_call_operand.vmem [shape: f32[4], index: 3, kind: input, shape index: {}]   ;;  %s2409_s4 = inlined_call_operand.vmem [shape: bf16[2,4,8,256], index: 4, kind: input, shape index: {}]   ;;  %s2410_s5 = inlined_call_operand.vmem [shape: f32[2,4,8,256], index: 5, kind: output, shape index: {}]  }
   0x1   :  { %11 = vsyncpa [#allocation5], 0 }
   0x2   :  { %12 = vsyncpa [#allocation8], 0  ;;  %s1599_s18 = smov 0   ;;  %s1601_s19 = smov 0  }
   0x3   :  { %s1603_s20 = smov 0  }
   0x4 LB: > { %s199_s23 = sshll.u32 %s2406_s1, 4  ;;  %s1237_s24 = sadd.s32 4294967295, %s1563_s20   ;;  %s1563_s20 = sphi %s1603_s20, %s18_s20   ;;  %s1559_s19 = sphi %s1601_s19, %s2421_s19   ;;  %s1555_s18 = sphi %s1599_s18, %s2420_s18   ;;  %s200_s23 = int_to_ptr.vmem [resolvable:$true] %s199_s23 }
   0x5   : > { %p1239_p0 = scmp.ge.s32.totalorder %s1563_s20, 1  ;;  %p175_p1 = scmp.lt.s32.totalorder %s1563_s20, 3 }
   0x6   : > { %p1620_p2 = scmp.eq.s32.totalorder %s1237_s24, 0  ;;  %s30_s27 = sadd.s32 1, %s1559_s19 }
   0x7   : > { %p1624_p3 = pnand %p1239_p0, %p175_p1  ;;  %s188_s30 = sshll.u32 %s2405_s0, 4  ;;  %s189_s30 = int_to_ptr.vmem [resolvable:$true] %s188_s30 }
   0x8   : > { %s2414_s25 = scalar_select %p1620_p2, 1, 0 }
   0x9   : > { %s2415_s26 = scalar_select %p1624_p3, 1, 0 }
   0xa   : > { %p1388_p4 = pneg %p1624_p3  ;;  %p1640_p6 = scmp.ge.s32.totalorder %s30_s27, 2 }
   0xb   : > { %s210_s10 = sshll.u32 %s2407_s2, 4  ;;  %s1469_s11 = scalar_lea.vmem %s200_s23, 16  ;;  %s211_s10 = int_to_ptr.vmem [resolvable:$true] %s210_s10 }
   0xc   : > { %p1636_p5 = pnand %p1620_p2, %p1388_p4  ;;  %p1470_p7 = scmp.ne.s32.totalorder %s200_s23, %s1469_s11 }
   0xd   : > { %p1477_p11 = scmp.lt.s32.totalorder %s200_s23, %s200_s23  ;;  %p1478_p12 = scmp.lt.s32.totalorder %s1469_s11, %s1469_s11 }
   0xe   : > { %p1471_p8 = pneg %p1636_p5 }
   0xf   : > { %p1479_p13 = por %p1478_p12, %p1477_p11 }
  0x10   : > { %p1472_p9 = pnand %p1471_p8, %p1470_p7 }
  0x12   : > { %p1473_p10 = pneg %p1472_p9 }
  0x14   : > { %p1480_p0 = pnand %p1479_p13, %p1473_p10 }
  0x16   : > { %1483 = shalt.err (!%p1480_p0)
}
  0x17   : > { %s1565_s12 = smov [#allocation4]   ;;  %s2423_s27 = smov (%p1640_p6, %s30_s27), 0 }
  0x18   : > { %1394 = dma.vmem_to_smem (!%p1636_p5), %s200_s23, 16, %s1565_s12, [#allocation5]  }
  0x19   : > { %s1484_s13 = scalar_lea.vmem %s189_s30, 64  ;;  %p1492_p9 = scmp.lt.s32.totalorder %s189_s30, %s189_s30 }
  0x1a   : > { %p1485_p1 = scmp.ne.s32.totalorder %s189_s30, %s1484_s13  ;;  %p1493_p2 = scmp.lt.s32.totalorder %s1484_s13, %s1484_s13 }
  0x1c   : > { %p1487_p4 = pnand %p1485_p1, %p1471_p8  ;;  %p1494_p11 = por %p1493_p2, %p1492_p9 }
  0x1e   : > { %p1488_p7 = pneg %p1487_p4 }
  0x20   : > { %p1495_p10 = pnand %p1494_p11, %p1488_p7 }
  0x22   : > { %1498 = shalt.err (!%p1495_p10)
}
  0x23   : > { %s1566_s14 = smov [#allocation2]   ;;  %s1499_s15 = scalar_lea.vmem %s211_s10, 64 }
  0x24   : > { %1391 = dma.vmem_to_smem (!%p1636_p5), %s189_s30, 64, %s1566_s14, [#allocation3]  }
  0x25   : > { %p1500_p6 = scmp.ne.s32.totalorder %s211_s10, %s1499_s15  ;;  %p1507_p0 = scmp.lt.s32.totalorder %s211_s10, %s211_s10 }
  0x26   : > { %p1508_p1 = scmp.lt.s32.totalorder %s1499_s15, %s1499_s15 }
  0x27   : > { %p1502_p12 = pnand %p1500_p6, %p1471_p8 }
  0x28   : > { %p1509_p4 = por %p1508_p1, %p1507_p0 }
  0x29   : > { %p1503_p13 = pneg %p1502_p12 }
  0x2b   : > { %p1510_p3 = pnand %p1509_p4, %p1503_p13 }
  0x2d   : > { %1513 = shalt.err (!%p1510_p3)
}
  0x2e   : > { %s1567_s16 = smov [#allocation6]   ;;  %s221_s22 = sshll.u32 %s2408_s3, 4  ;;  %s222_s22 = int_to_ptr.vmem [resolvable:$true] %s221_s22 }
  0x2f   : > { %1397 = dma.vmem_to_smem (!%p1636_p5), %s211_s10, 64, %s1567_s16, [#allocation5]  }
  0x30   : > { %s1514_s23 = scalar_lea.vmem %s222_s22, 16  ;;  %p1522_p11 = scmp.lt.s32.totalorder %s222_s22, %s222_s22 }
  0x31   : > { %p1515_p2 = scmp.ne.s32.totalorder %s222_s22, %s1514_s23  ;;  %p1523_p10 = scmp.lt.s32.totalorder %s1514_s23, %s1514_s23 }
  0x33   : > { %p1517_p7 = pnand %p1515_p2, %p1471_p8  ;;  %p1524_p6 = por %p1523_p10, %p1522_p11 }
  0x35   : > { %p1518_p9 = pneg %p1517_p7 }
  0x37   : > { %p1525_p3 = pnand %p1524_p6, %p1518_p9 }
  0x39   : > { %1528 = shalt.err (!%p1525_p3)
}
  0x3a   : > { %s1568_s24 = smov [#allocation7]   ;;  %p2418_p12 = scmp.ne.s32.totalorder %s2415_s26, 0 }
  0x3b   : > { %1400 = dma.vmem_to_smem (!%p1636_p5), %s222_s22, 16, %s1568_s24, [#allocation8]  }
  0x3c   : > { %247 = sbr.rel (%p2418_p12) target bundleno = 266 (0x10a), region = 40  ;;  %p2419_p13 = scmp.ne.s32.totalorder (!%p2418_p12), %s2414_s25, 0 }
  0x43   : > { %1542 = dma.done.wait (%p2419_p13), [#allocation3], 64  }
  0x44   : > { %1544 = vsyncadd (%p2419_p13), [#allocation3], 4294967232 }
  0x45   : > { %1546 = dma.done.wait (%p2419_p13), [#allocation5], 80  }
  0x46   : > { %1548 = vsyncadd (%p2419_p13), [#allocation5], 4294967216 }
  0x47   : > { %1550 = dma.done.wait (%p2419_p13), [#allocation8], 16  }
  0x48   : > { %1552 = vsyncadd (%p2419_p13), [#allocation8], 4294967280 }
  0x49   : > { %265 = sfence }
  0x4a   : > { %p297_p5 = scmp.lt.s32.totalorder %s1555_s18, 1  ;;  %s1691_s26 = sld [smem:[#allocation2]]  ;;  %vm352_vm0 = vcmask 1040384   ;;  %vm377_vm1 = vcmask 1046528  }
  0x4b   : > { %s1709_s25 = sld [smem:[#allocation2 + $0x1]]  ;;  %s1719_s7 = sld [smem:[#allocation2 + $0x2]] }
  0x4c   : > { %s2425_s18 = smov (!%p297_p5, %s1555_s18), 1  ;;  %s1721_s8 = sld [smem:[#allocation2 + $0x3]] }
  0x4d   : > { %s1370_s28 = sshll.u32 %s2425_s18, 5  ;;  %s1727_s9 = sld [smem:[#allocation2 + $0x4]] }
  0x4e   : > { %s304_s6 = scalar_lea.vmem %s2409_s4, %s1370_s28  ;;  %s1733_s10 = sld [smem:[#allocation2 + $0x5]] }
  0x4f   : > { %v316_v0 = vld [vmem:[%s304_s6] sm:$0xff]  ;;  %v317_v1 = vld [vmem:[%s304_s6 + $0x8] sm:$0xff]  ;;  %v318_v2 = vld [vmem:[%s304_s6 + $0x10] sm:$0xff]  ;;  %s1747_s11 = sld [smem:[#allocation2 + $0x6]]  ;;  %s1761_s12 = sld [smem:[#allocation2 + $0x7]] }
  0x50   : > { %v387_v3 = vstv %s1691_s26  ;;  %v319_v4 = vld [vmem:[%s304_s6 + $0x18] sm:$0xff]  ;;  %v1701_v5 = vunpack.c.l.bf16 %v316_v0  ;;  %v1703_v6 = vunpack.c.h.bf16 %v316_v0  ;;  %v1705_v7 = vunpack.c.l.bf16 %v317_v1  ;;  %s1767_s13 = sld [smem:[#allocation2 + $0x8]]  ;;  %s1773_s14 = sld [smem:[#allocation2 + $0x9]] }
  0x51   : > { %v1707_v8 = vunpack.c.h.bf16 %v317_v1  ;;  %v1711_v9 = vunpack.c.l.bf16 %v318_v2  ;;  %v1713_v10 = vunpack.c.h.bf16 %v318_v2  ;;  %v1715_v11 = vunpack.c.l.bf16 %v319_v4  ;;  %s1787_s15 = sld [smem:[#allocation2 + $0xa]]  ;;  %s1809_s16 = sld [smem:[#allocation2 + $0xb]] }
  0x52   : > { %v1717_v12 = vunpack.c.h.bf16 %v319_v4  ;;  %v336_v13 = vrot.slane %v1701_v5, 7  ;;  %v337_v14 = vrot.slane %v1703_v6, 7  ;;  %v338_v15 = vrot.slane %v1705_v7, 7  ;;  %s1811_s17 = sld [smem:[#allocation4]]  ;;  %s1819_s22 = sld [smem:[#allocation2 + $0x81]] }
  0x53   : > { %v339_v16 = vrot.slane %v1707_v8, 7  ;;  %v340_v17 = vrot.slane %v1711_v9, 7  ;;  %v341_v18 = vrot.slane %v1713_v10, 7  ;;  %v342_v19 = vrot.slane %v1715_v11, 7  ;;  %s1817_s21 = sld [smem:[#allocation2 + $0x80]]  ;;  %s1829_s23 = sld [smem:[#allocation2 + $0x82]] }
  0x54   : > { %v343_v20 = vrot.slane %v1717_v12, 7  ;;  %v1736_v21 = vsel %vm352_vm0, 0.0, %v336_v13  ;;  %v1739_v22 = vsel %vm352_vm0, 0.0, %v337_v14  ;;  %v1742_v23 = vsel %vm352_vm0, 0.0, %v338_v15  ;;  %s1831_s24 = sld [smem:[#allocation2 + $0x83]]  ;;  %s1843_s26 = sld [smem:[#allocation2 + $0x84]] }
  0x55   : > { %v1745_v24 = vsel %vm352_vm0, 0.0, %v339_v16  ;;  %v1750_v25 = vsel %vm352_vm0, 0.0, %v340_v17  ;;  %v1753_v26 = vsel %vm352_vm0, 0.0, %v341_v18  ;;  %v1756_v27 = vsel %vm352_vm0, 0.0, %v342_v19  ;;  %s1845_s28 = sld [smem:[#allocation2 + $0x85]]  ;;  %s1855_s29 = sld [smem:[#allocation2 + $0x86]] }
  0x56   : > { %v1759_v28 = vsel %vm352_vm0, 0.0, %v343_v20  ;;  %v361_v29 = vrot.slane %v1701_v5, 1  ;;  %v362_v30 = vrot.slane %v1703_v6, 1  ;;  %v363_v31 = vrot.slane %v1705_v7, 1  ;;  %s1857_s30 = sld [smem:[#allocation2 + $0x87]]  ;;  %s1867_s6 = sld [smem:[#allocation2 + $0x88]] }
  0x57   : > { %v364_v32 = vrot.slane %v1707_v8, 1  ;;  %v365_v33 = vrot.slane %v1711_v9, 1  ;;  %v366_v34 = vrot.slane %v1713_v10, 1  ;;  %v367_v35 = vrot.slane %v1715_v11, 1 }
  0x58   : > { %v368_v36 = vrot.slane %v1717_v12, 1  ;;  %v1776_v37 = vsel %vm377_vm1, %v361_v29, 0.0  ;;  %v1779_v38 = vsel %vm377_vm1, %v362_v30, 0.0  ;;  %v1782_v39 = vsel %vm377_vm1, %v363_v31, 0.0 }
  0x59   : > { %v1785_v40 = vsel %vm377_vm1, %v364_v32, 0.0  ;;  %v1790_v41 = vsel %vm377_vm1, %v365_v33, 0.0  ;;  %v1793_v42 = vsel %vm377_vm1, %v366_v34, 0.0  ;;  %v1796_v43 = vsel %vm377_vm1, %v367_v35, 0.0 }
  0x5a   : > { %v1799_v44 = vsel %vm377_vm1, %v368_v36, 0.0  ;;  %v388_v45 = vmul.f32 %v387_v3, %v1736_v21  ;;  %v389_v46 = vmul.f32 %v387_v3, %v1739_v22  ;;  %v391_v47 = vstv %s1709_s25  ;;  %s1869_s25 = sld [smem:[#allocation2 + $0x89]] }
  0x5b   : > { %v397_v48 = vstv %s1719_s7  ;;  %v392_v49 = vmul.f32 %v391_v47, %v1742_v23  ;;  %v393_v50 = vmul.f32 %v391_v47, %v1745_v24  ;;  %v403_v53 = vstv %s1721_s8  ;;  %s1877_s7 = sld [smem:[#allocation2 + $0x8a]]  ;;  %s1879_s8 = sld [smem:[#allocation2 + $0x8b]] }
  0x5c   : > { %v398_v51 = vmul.f32 %v397_v48, %v1750_v25  ;;  %v399_v52 = vmul.f32 %v397_v48, %v1753_v26  ;;  %v409_v54 = vstv %s1727_s9  ;;  %v415_v55 = vstv %s1733_s10  ;;  %s1885_s9 = sld [smem:[#allocation4 + $0x1]]  ;;  %s1887_s10 = sld [smem:[#allocation2 + $0x100]] }
  0x5d   : > { %v421_v56 = vstv %s1747_s11  ;;  %v394_v57 = vadd.f32 %v392_v49, %v388_v45  ;;  %v395_v58 = vadd.f32 %v393_v50, %v389_v46  ;;  %v404_v59 = vmul.f32 %v403_v53, %v1756_v27  ;;  %s1891_s11 = sld [smem:[#allocation2 + $0x101]] }
  0x5e   : > { %v405_v60 = vmul.f32 %v403_v53, %v1759_v28  ;;  %v410_v61 = vmul.f32 %v409_v54, %v1701_v5  ;;  %v411_v62 = vmul.f32 %v409_v54, %v1703_v6  ;;  %v416_v63 = vmul.f32 %v415_v55, %v1705_v7 }
  0x5f   : > { %v417_v0 = vmul.f32 %v415_v55, %v1707_v8  ;;  %v400_v1 = vadd.f32 %v398_v51, %v394_v57  ;;  %v401_v2 = vadd.f32 %v399_v52, %v395_v58  ;;  %v422_v3 = vmul.f32 %v421_v56, %v1711_v9 }
  0x60   : > { %v423_v4 = vmul.f32 %v421_v56, %v1713_v10  ;;  %v427_v13 = vstv %s1761_s12  ;;  %v433_v14 = vstv %s1767_s13  ;;  %v439_v15 = vstv %s1773_s14  ;;  %s1893_s12 = sld [smem:[#allocation2 + $0x102]]  ;;  %s1897_s13 = sld [smem:[#allocation2 + $0x103]] }
  0x61   : > { %v445_v16 = vstv %s1787_s15  ;;  %v406_v17 = vadd.f32 %v404_v59, %v400_v1  ;;  %v407_v18 = vadd.f32 %v405_v60, %v401_v2  ;;  %v428_v19 = vmul.f32 %v427_v13, %v1715_v11  ;;  %s1899_s14 = sld [smem:[#allocation2 + $0x104]]  ;;  %s1917_s15 = sld [smem:[#allocation2 + $0x105]] }
  0x62   : > { %v429_v20 = vmul.f32 %v427_v13, %v1717_v12  ;;  %v434_v29 = vmul.f32 %v433_v14, %v1776_v37  ;;  %v435_v30 = vmul.f32 %v433_v14, %v1779_v38  ;;  %v440_v31 = vmul.f32 %v439_v15, %v1782_v39 }
  0x63   : > { %v441_v32 = vmul.f32 %v439_v15, %v1785_v40  ;;  %v412_v33 = vadd.f32 %v410_v61, %v406_v17  ;;  %v413_v34 = vadd.f32 %v411_v62, %v407_v18  ;;  %v446_v35 = vmul.f32 %v445_v16, %v1790_v41 }
  0x64   : > { %v447_v36 = vmul.f32 %v445_v16, %v1793_v42  ;;  %v451_v45 = vstv %s1809_s16  ;;  %v457_v46 = vstv %s1811_s17  ;;  %v461_v47 = vstv %s1817_s21  ;;  %s1919_s16 = sld [smem:[#allocation2 + $0x106]]  ;;  %s1929_s17 = sld [smem:[#allocation2 + $0x107]] }
  0x65   : > { %v465_v48 = vstv %s1819_s22  ;;  %v418_v49 = vadd.f32 %v416_v63, %v412_v33  ;;  %v419_v50 = vadd.f32 %v417_v0, %v413_v34  ;;  %v452_v51 = vmul.f32 %v451_v45, %v1796_v43  ;;  %s1931_s21 = sld [smem:[#allocation2 + $0x108]]  ;;  %s1937_s22 = sld [smem:[#allocation2 + $0x109]] }
  0x66   : > { %v453_v52 = vmul.f32 %v451_v45, %v1799_v44  ;;  %v462_v53 = vmul.f32 %v461_v47, %v1736_v21  ;;  %v463_v54 = vmul.f32 %v461_v47, %v1739_v22  ;;  %v466_v55 = vmul.f32 %v465_v48, %v1742_v23 }
  0x67   : > { %v467_v56 = vmul.f32 %v465_v48, %v1745_v24  ;;  %v424_v57 = vadd.f32 %v422_v3, %v418_v49  ;;  %v425_v58 = vadd.f32 %v423_v4, %v419_v50  ;;  %v471_v59 = vstv %s1829_s23  ;;  %s1939_s23 = sld [smem:[#allocation2 + $0x10a]] }
  0x68   : > { %v477_v60 = vstv %s1831_s24  ;;  %v468_v61 = vadd.f32 %v466_v55, %v462_v53  ;;  %v472_v63 = vmul.f32 %v471_v59, %v1750_v25  ;;  %v473_v0 = vmul.f32 %v471_v59, %v1753_v26  ;;  %s1947_s24 = sld [smem:[#allocation2 + $0x10b]] }
  0x69   : > { %v469_v62 = vadd.f32 %v467_v56, %v463_v54  ;;  %v430_v1 = vadd.f32 %v428_v19, %v424_v57  ;;  %v431_v2 = vadd.f32 %v429_v20, %v425_v58  ;;  %v478_v13 = vmul.f32 %v477_v60, %v1756_v27 }
  0x6a   : > { %v479_v3 = vmul.f32 %v477_v60, %v1759_v28  ;;  %v474_v4 = vadd.f32 %v472_v63, %v468_v61  ;;  %v483_v15 = vstv %s1843_s26  ;;  %v489_v16 = vstv %s1845_s28  ;;  %s1949_s26 = sld [smem:[#allocation4 + $0x2]]  ;;  %s1955_s28 = sld [smem:[#allocation2 + $0x180]] }
  0x6b   : > { %v475_v14 = vadd.f32 %v473_v0, %v469_v62  ;;  %v436_v17 = vadd.f32 %v434_v29, %v430_v1  ;;  %v437_v18 = vadd.f32 %v435_v30, %v431_v2  ;;  %v484_v33 = vmul.f32 %v483_v15, %v1701_v5 }
  0x6c   : > { %v485_v34 = vmul.f32 %v483_v15, %v1703_v6  ;;  %v480_v19 = vadd.f32 %v478_v13, %v474_v4  ;;  %v490_v45 = vmul.f32 %v489_v16, %v1705_v7  ;;  %v491_v47 = vmul.f32 %v489_v16, %v1707_v8 }
  0x6d   : > { %v481_v20 = vadd.f32 %v479_v3, %v475_v14  ;;  %v442_v48 = vadd.f32 %v440_v31, %v436_v17  ;;  %v443_v49 = vadd.f32 %v441_v32, %v437_v18  ;;  %v495_v50 = vstv %s1855_s29  ;;  %s1957_s29 = sld [smem:[#allocation2 + $0x181]] }
  0x6e   : > { %v501_v53 = vstv %s1857_s30  ;;  %v486_v29 = vadd.f32 %v484_v33, %v480_v19  ;;  %v496_v54 = vmul.f32 %v495_v50, %v1711_v9  ;;  %v497_v55 = vmul.f32 %v495_v50, %v1713_v10  ;;  %s1967_s30 = sld [smem:[#allocation2 + $0x182]] }
  0x6f   : > { %v487_v30 = vadd.f32 %v485_v34, %v481_v20  ;;  %v448_v31 = vadd.f32 %v446_v35, %v442_v48  ;;  %v449_v32 = vadd.f32 %v447_v36, %v443_v49  ;;  %v502_v56 = vmul.f32 %v501_v53, %v1715_v11 }
  0x70   : > { %v503_v57 = vmul.f32 %v501_v53, %v1717_v12  ;;  %v492_v58 = vadd.f32 %v490_v45, %v486_v29  ;;  %v507_v60 = vstv %s1867_s6  ;;  %v513_v61 = vstv %s1869_s25  ;;  %s1969_s6 = sld [smem:[#allocation2 + $0x183]]  ;;  %s1981_s25 = sld [smem:[#allocation2 + $0x184]] }
  0x71   : > { %v493_v59 = vadd.f32 %v491_v47, %v487_v30  ;;  %v454_v62 = vadd.f32 %v452_v51, %v448_v31  ;;  %v455_v63 = vadd.f32 %v453_v52, %v449_v32  ;;  %v508_v35 = vmul.f32 %v507_v60, %v1776_v37 }
  0x72   : > { %v509_v36 = vmul.f32 %v507_v60, %v1779_v38  ;;  %v498_v0 = vadd.f32 %v496_v54, %v492_v58  ;;  %v514_v2 = vmul.f32 %v513_v61, %v1782_v39  ;;  %v515_v13 = vmul.f32 %v513_v61, %v1785_v40 }
  0x73   : > { %v499_v1 = vadd.f32 %v497_v55, %v493_v59  ;;  %v1909_v3 = vadd.f32 %v457_v46, %v454_v62  ;;  %v1913_v4 = vadd.f32 %v457_v46, %v455_v63  ;;  %v519_v51 = vstv %s1877_s7  ;;  %s1983_s7 = sld [smem:[#allocation2 + $0x185]] }
  0x74   : > { %v525_v52 = vstv %s1879_s8  ;;  %v504_v14 = vadd.f32 %v502_v56, %v498_v0  ;;  %v520_v16 = vmul.f32 %v519_v51, %v1790_v41  ;;  %v521_v17 = vmul.f32 %v519_v51, %v1793_v42  ;;  %s1993_s8 = sld [smem:[#allocation2 + $0x186]] }
  0x75   : > { %v505_v15 = vadd.f32 %v503_v57, %v499_v1  ;;  %v526_v18 = vmul.f32 %v525_v52, %v1796_v43  ;;  %v527_v46 = vmul.f32 %v525_v52, %v1799_v44  ;;  %v531_v33 = vstv %s1885_s9  ;;  %s1995_s9 = sld [smem:[#allocation2 + $0x187]] }
  0x76   : > { %v535_v34 = vstv %s1887_s10  ;;  %v510_v19 = vadd.f32 %v508_v35, %v504_v14  ;;  %v539_v48 = vstv %s1891_s11  ;;  %v545_v49 = vstv %s1893_s12  ;;  %s2005_s10 = sld [smem:[#allocation2 + $0x188]]  ;;  %s2007_s11 = sld [smem:[#allocation2 + $0x189]] }
  0x77   : > { %v511_v20 = vadd.f32 %v509_v36, %v505_v15  ;;  %v536_v45 = vmul.f32 %v535_v34, %v1736_v21  ;;  %v537_v47 = vmul.f32 %v535_v34, %v1739_v22  ;;  %v551_v50 = vstv %s1897_s13  ;;  %s2013_s12 = sld [smem:[#allocation2 + $0x18a]]  ;;  %s2017_s13 = sld [smem:[#allocation2 + $0x18b]] }
  0x78   : > { %v557_v53 = vstv %s1899_s14  ;;  %v516_v29 = vadd.f32 %v514_v2, %v510_v19  ;;  %v540_v54 = vmul.f32 %v539_v48, %v1742_v23  ;;  %v541_v55 = vmul.f32 %v539_v48, %v1745_v24  ;;  %s2019_s14 = sld [smem:[#allocation4 + $0x3]] }
  0x79   : > { %v517_v30 = vadd.f32 %v515_v13, %v511_v20  ;;  %v546_v31 = vmul.f32 %v545_v49, %v1750_v25  ;;  %v547_v32 = vmul.f32 %v545_v49, %v1753_v26  ;;  %v552_v56 = vmul.f32 %v551_v50, %v1756_v27 }
  0x7a   : > { %v553_v57 = vmul.f32 %v551_v50, %v1759_v28  ;;  %v522_v58 = vadd.f32 %v520_v16, %v516_v29  ;;  %v542_v60 = vadd.f32 %v540_v54, %v536_v45  ;;  %v543_v61 = vadd.f32 %v541_v55, %v537_v47 }
  0x7b   : > { %v523_v59 = vadd.f32 %v521_v17, %v517_v30  ;;  %v558_v62 = vmul.f32 %v557_v53, %v1701_v5  ;;  %v559_v63 = vmul.f32 %v557_v53, %v1703_v6  ;;  %v563_v35 = vstv %s1917_s15  ;;  %s2045_s15 = sld [smem:[#allocation6]] }
  0x7c   : > { %v569_v36 = vstv %s1919_s16  ;;  %v528_v0 = vadd.f32 %v526_v18, %v522_v58  ;;  %v548_v2 = vadd.f32 %v546_v31, %v542_v60  ;;  %v549_v13 = vadd.f32 %v547_v32, %v543_v61  ;;  %s2051_s16 = sld [smem:[#allocation6 + $0x1]] }
  0x7d   : > { %v529_v1 = vadd.f32 %v527_v46, %v523_v59  ;;  %v564_v51 = vmul.f32 %v563_v35, %v1705_v7  ;;  %v565_v52 = vmul.f32 %v563_v35, %v1707_v8  ;;  %v570_v14 = vmul.f32 %v569_v36, %v1711_v9 }
  0x7e   : > { %v571_v15 = vmul.f32 %v569_v36, %v1713_v10  ;;  %v1963_v16 = vadd.f32 %v531_v33, %v528_v0  ;;  %v554_v34 = vadd.f32 %v552_v56, %v548_v2  ;;  %v555_v19 = vadd.f32 %v553_v57, %v549_v13 }
  0x7f   : > { %v1965_v17 = vadd.f32 %v531_v33, %v529_v1  ;;  %v575_v18 = vstv %s1929_s17  ;;  %v581_v46 = vstv %s1931_s21  ;;  %v587_v20 = vstv %s1937_s22  ;;  %s2053_s17 = sld [smem:[#allocation6 + $0x2]]  ;;  %s2073_s21 = sld [smem:[#allocation6 + $0x3]] }
  0x80   : > { %v593_v45 = vstv %s1939_s23  ;;  %v560_v47 = vadd.f32 %v558_v62, %v554_v34  ;;  %v561_v48 = vadd.f32 %v559_v63, %v555_v19  ;;  %v576_v49 = vmul.f32 %v575_v18, %v1715_v11  ;;  %s2081_s22 = sld [smem:[#allocation6 + $0x4]]  ;;  %s2101_s23 = sld [smem:[#allocation6 + $0x5]] }
  0x81   : > { %v577_v33 = vmul.f32 %v575_v18, %v1717_v12  ;;  %v582_v50 = vmul.f32 %v581_v46, %v1776_v37  ;;  %v583_v53 = vmul.f32 %v581_v46, %v1779_v38  ;;  %v588_v29 = vmul.f32 %v587_v20, %v1782_v39 }
  0x82   : > { %v589_v30 = vmul.f32 %v587_v20, %v1785_v40  ;;  %v566_v54 = vadd.f32 %v564_v51, %v560_v47  ;;  %v567_v55 = vadd.f32 %v565_v52, %v561_v48  ;;  %v594_v31 = vmul.f32 %v593_v45, %v1790_v41 }
  0x83   : > { %v595_v32 = vmul.f32 %v593_v45, %v1793_v42  ;;  %v599_v56 = vstv %s1947_s24  ;;  %v605_v57 = vstv %s1949_s26  ;;  %v609_v58 = vstv %s1955_s28  ;;  %s2103_s24 = sld [smem:[#allocation6 + $0x6]]  ;;  %s2117_s26 = sld [smem:[#allocation6 + $0x7]] }
  0x84   : > { %v613_v59 = vstv %s1957_s29  ;;  %v572_v60 = vadd.f32 %v570_v14, %v566_v54  ;;  %v573_v61 = vadd.f32 %v571_v15, %v567_v55  ;;  %v600_v62 = vmul.f32 %v599_v56, %v1796_v43  ;;  %s2119_s28 = sld [smem:[#allocation6 + $0x8]]  ;;  %s2125_s29 = sld [smem:[#allocation6 + $0x9]] }
  0x85   : > { %v601_v63 = vmul.f32 %v599_v56, %v1799_v44  ;;  %v610_v35 = vmul.f32 %v609_v58, %v1736_v21  ;;  %v611_v36 = vmul.f32 %v609_v58, %v1739_v22  ;;  %v614_v0 = vmul.f32 %v613_v59, %v1742_v23 }
  0x86   : > { %v615_v1 = vmul.f32 %v613_v59, %v1745_v24  ;;  %v578_v2 = vadd.f32 %v576_v49, %v572_v60  ;;  %v579_v13 = vadd.f32 %v577_v33, %v573_v61  ;;  %v619_v51 = vstv %s1967_s30  ;;  %s2131_s30 = sld [smem:[#allocation6 + $0xa]] }
  0x87   : > { %v625_v52 = vstv %s1969_s6  ;;  %v616_v14 = vadd.f32 %v614_v0, %v610_v35  ;;  %v620_v34 = vmul.f32 %v619_v51, %v1750_v25  ;;  %v621_v19 = vmul.f32 %v619_v51, %v1753_v26  ;;  %s2135_s6 = sld [smem:[#allocation6 + $0xb]] }
  0x88   : > { %v617_v15 = vadd.f32 %v615_v1, %v611_v36  ;;  %v584_v21 = vadd.f32 %v582_v50, %v578_v2  ;;  %v585_v22 = vadd.f32 %v583_v53, %v579_v13  ;;  %v626_v23 = vmul.f32 %v625_v52, %v1756_v27 }
  0x89   : > { %v627_v24 = vmul.f32 %v625_v52, %v1759_v28  ;;  %v622_v18 = vadd.f32 %v620_v34, %v616_v14  ;;  %v631_v20 = vstv %s1981_s25  ;;  %v637_v45 = vstv %s1983_s7  ;;  %s2149_s25 = sld [smem:[#allocation7]] }
  0x8a   : > { %v623_v46 = vadd.f32 %v621_v19, %v617_v15  ;;  %v590_v25 = vadd.f32 %v588_v29, %v584_v21  ;;  %v591_v26 = vadd.f32 %v589_v30, %v585_v22  ;;  %v632_v47 = vmul.f32 %v631_v20, %v1701_v5  ;;  %s2153_s7 = sld [smem:[#allocation6 + $0x80]] }
  0x8b   : > { %v633_v48 = vmul.f32 %v631_v20, %v1703_v6  ;;  %v628_v27 = vadd.f32 %v626_v23, %v622_v18  ;;  %v638_v49 = vmul.f32 %v637_v45, %v1705_v7  ;;  %v639_v33 = vmul.f32 %v637_v45, %v1707_v8 }
  0x8c   : > { %v629_v28 = vadd.f32 %v627_v24, %v623_v46  ;;  %v596_v50 = vadd.f32 %v594_v31, %v590_v25  ;;  %v597_v53 = vadd.f32 %v595_v32, %v591_v26  ;;  %v643_v29 = vstv %s1993_s8  ;;  %s2155_s8 = sld [smem:[#allocation6 + $0x81]] }
  0x8d   : > { %v649_v30 = vstv %s1995_s9  ;;  %v634_v54 = vadd.f32 %v632_v47, %v628_v27  ;;  %v644_v56 = vmul.f32 %v643_v29, %v1711_v9  ;;  %v645_v58 = vmul.f32 %v643_v29, %v1713_v10  ;;  %s2161_s9 = sld [smem:[#allocation6 + $0x82]] }
  0x8e   : > { %v635_v55 = vadd.f32 %v633_v48, %v629_v28  ;;  %v602_v59 = vadd.f32 %v600_v62, %v596_v50  ;;  %v603_v60 = vadd.f32 %v601_v63, %v597_v53  ;;  %v650_v61 = vmul.f32 %v649_v30, %v1715_v11 }
  0x8f   : > { %v651_v35 = vmul.f32 %v649_v30, %v1717_v12  ;;  %v640_v36 = vadd.f32 %v638_v49, %v634_v54  ;;  %v655_v32 = vstv %s2005_s10  ;;  %v661_v0 = vstv %s2007_s11  ;;  %s2163_s10 = sld [smem:[#allocation6 + $0x83]]  ;;  %s2177_s11 = sld [smem:[#allocation6 + $0x84]] }
  0x90   : > { %v641_v31 = vadd.f32 %v639_v33, %v635_v55  ;;  %v2031_v1 = vadd.f32 %v605_v57, %v602_v59  ;;  %v2033_v2 = vadd.f32 %v605_v57, %v603_v60  ;;  %v656_v13 = vmul.f32 %v655_v32, %v1776_v37 }
  0x91   : > { %v657_v62 = vmul.f32 %v655_v32, %v1779_v38  ;;  %v646_v51 = vadd.f32 %v644_v56, %v640_v36  ;;  %v662_v52 = vmul.f32 %v661_v0, %v1782_v39  ;;  %v663_v14 = vmul.f32 %v661_v0, %v1785_v40 }
  0x92   : > { %v647_v63 = vadd.f32 %v645_v58, %v641_v31  ;;  %v667_v15 = vstv %s2013_s12  ;;  %v673_v34 = vstv %s2017_s13  ;;  %v679_v19 = vstv %s2019_s14  ;;  %s2179_s12 = sld [smem:[#allocation6 + $0x85]]  ;;  %s2189_s13 = sld [smem:[#allocation6 + $0x86]] }
  0x93   : > { %v690_v21 = vrot.slane %v1909_v3, 7  ;;  %v652_v22 = vadd.f32 %v650_v61, %v646_v51  ;;  %v668_v57 = vmul.f32 %v667_v15, %v1790_v41  ;;  %v669_v24 = vmul.f32 %v667_v15, %v1793_v42  ;;  %s2191_s14 = sld [smem:[#allocation6 + $0x87]] }
  0x94   : > { %v653_v23 = vadd.f32 %v651_v35, %v647_v63  ;;  %v674_v37 = vmul.f32 %v673_v34, %v1796_v43  ;;  %v675_v38 = vmul.f32 %v673_v34, %v1799_v44  ;;  %v691_v39 = vrot.slane %v1913_v4, 7 }
  0x95   : > { %v692_v40 = vrot.slane %v1963_v16, 7  ;;  %v658_v18 = vadd.f32 %v656_v13, %v652_v22  ;;  %v693_v41 = vrot.slane %v1965_v17, 7  ;;  %v694_v42 = vrot.slane %v2031_v1, 7 }
  0x96   : > { %v659_v46 = vadd.f32 %v657_v62, %v653_v23  ;;  %v695_v20 = vrot.slane %v2033_v2, 7  ;;  %v2059_v43 = vsel %vm352_vm0, 0.0, %v690_v21  ;;  %v2062_v44 = vsel %vm352_vm0, 0.0, %v691_v39 }
  0x97   : > { %v2065_v45 = vsel %vm352_vm0, 0.0, %v692_v40  ;;  %v664_v25 = vadd.f32 %v662_v52, %v658_v18  ;;  %v2068_v47 = vsel %vm352_vm0, 0.0, %v693_v41  ;;  %v2071_v48 = vsel %vm352_vm0, 0.0, %v694_v42 }
  0x98   : > { %v665_v26 = vadd.f32 %v663_v14, %v659_v46  ;;  %v2076_v27 = vsel %vm352_vm0, 0.0, %v695_v20  ;;  %v714_v28 = vrot.slane %v1909_v3, 1  ;;  %v715_v49 = vrot.slane %v1913_v4, 1 }
  0x99   : > { %v716_v33 = vrot.slane %v1963_v16, 1  ;;  %v670_v50 = vadd.f32 %v668_v57, %v664_v25  ;;  %v717_v29 = vrot.slane %v1965_v17, 1  ;;  %v718_v30 = vrot.slane %v2031_v1, 1 }
  0x9a   : > { %v671_v53 = vadd.f32 %v669_v24, %v665_v26  ;;  %v719_v54 = vrot.slane %v2033_v2, 1  ;;  %v2087_v55 = vsel %vm377_vm1, %v714_v28, 0.0  ;;  %v2090_v56 = vsel %vm377_vm1, %v715_v49, 0.0 }
  0x9b   : > { %v2093_v58 = vsel %vm377_vm1, %v716_v33, 0.0  ;;  %v676_v59 = vadd.f32 %v674_v37, %v670_v50  ;;  %v2096_v61 = vsel %vm377_vm1, %v717_v29, 0.0  ;;  %v2099_v35 = vsel %vm377_vm1, %v718_v30, 0.0 }
  0x9c   : > { %v677_v60 = vadd.f32 %v675_v38, %v671_v53  ;;  %v2106_v36 = vsel %vm377_vm1, %v719_v54, 0.0  ;;  %v739_v31 = vstv %s2045_s15  ;;  %v743_v32 = vstv %s2051_s16  ;;  %s2203_s15 = sld [smem:[#allocation6 + $0x88]]  ;;  %s2205_s16 = sld [smem:[#allocation6 + $0x89]] }
  0x9d   : > { %v749_v0 = vstv %s2053_s17  ;;  %v2111_v13 = vadd.f32 %v679_v19, %v676_v59  ;;  %v740_v51 = vmul.f32 %v739_v31, %v2059_v43  ;;  %v741_v63 = vmul.f32 %v739_v31, %v2062_v44  ;;  %s2213_s17 = sld [smem:[#allocation6 + $0x8a]] }
  0x9e   : > { %v2113_v62 = vadd.f32 %v679_v19, %v677_v60  ;;  %v744_v52 = vmul.f32 %v743_v32, %v2065_v45  ;;  %v745_v14 = vmul.f32 %v743_v32, %v2068_v47  ;;  %v750_v15 = vmul.f32 %v749_v0, %v2071_v48 }
  0x9f   : > { %v751_v34 = vmul.f32 %v749_v0, %v2076_v27  ;;  %v696_v19 = vrot.slane %v2111_v13, 7  ;;  %v720_v22 = vrot.slane %v2111_v13, 1  ;;  %v755_v37 = vstv %s2073_s21  ;;  %s2215_s21 = sld [smem:[#allocation6 + $0x8b]] }
  0xa0   : > { %v697_v21 = vrot.slane %v2113_v62, 7  ;;  %v721_v23 = vrot.slane %v2113_v62, 1  ;;  %v746_v57 = vadd.f32 %v744_v52, %v740_v51  ;;  %v747_v24 = vadd.f32 %v745_v14, %v741_v63 }
  0xa1   : > { %v761_v38 = vstv %s2081_s22  ;;  %v2138_v39 = vsel %vm352_vm0, 0.0, %v696_v19  ;;  %v2144_v18 = vsel %vm377_vm1, %v720_v22, 0.0  ;;  %v767_v49 = vstv %s2101_s23  ;;  %s2223_s22 = sld [smem:[#allocation7 + $0x1]]  ;;  %s2225_s23 = sld [smem:[#allocation6 + $0x100]] }
  0xa2   : > { %v2141_v40 = vsel %vm352_vm0, 0.0, %v697_v21  ;;  %v2147_v46 = vsel %vm377_vm1, %v721_v23, 0.0  ;;  %v752_v41 = vadd.f32 %v750_v15, %v746_v57  ;;  %v753_v42 = vadd.f32 %v751_v34, %v747_v24 }
  0xa3   : > { %v756_v20 = vmul.f32 %v755_v37, %v2138_v39  ;;  %v757_v25 = vmul.f32 %v755_v37, %v2141_v40  ;;  %v762_v26 = vmul.f32 %v761_v38, %v1909_v3  ;;  %v763_v28 = vmul.f32 %v761_v38, %v1913_v4 }
  0xa4   : > { %v773_v33 = vstv %s2103_s24  ;;  %v768_v29 = vmul.f32 %v767_v49, %v1963_v16  ;;  %v769_v30 = vmul.f32 %v767_v49, %v1965_v17  ;;  %v779_v60 = vstv %s2117_s26  ;;  %s2229_s24 = sld [smem:[#allocation6 + $0x101]]  ;;  %s2233_s26 = sld [smem:[#allocation6 + $0x102]] }
  0xa5   : > { %v758_v50 = vadd.f32 %v756_v20, %v752_v41  ;;  %v759_v53 = vadd.f32 %v757_v25, %v753_v42  ;;  %v774_v54 = vmul.f32 %v773_v33, %v2031_v1  ;;  %v775_v59 = vmul.f32 %v773_v33, %v2033_v2 }
  0xa6   : > { %v785_v31 = vstv %s2119_s28  ;;  %v780_v51 = vmul.f32 %v779_v60, %v2111_v13  ;;  %v781_v63 = vmul.f32 %v779_v60, %v2113_v62  ;;  %v791_v15 = vstv %s2125_s29  ;;  %s2237_s28 = sld [smem:[#allocation6 + $0x103]]  ;;  %s2239_s29 = sld [smem:[#allocation6 + $0x104]] }
  0xa7   : > { %v764_v32 = vadd.f32 %v762_v26, %v758_v50  ;;  %v765_v0 = vadd.f32 %v763_v28, %v759_v53  ;;  %v786_v52 = vmul.f32 %v785_v31, %v2087_v55  ;;  %v787_v14 = vmul.f32 %v785_v31, %v2090_v56 }
  0xa8   : > { %v797_v34 = vstv %s2131_s30  ;;  %v792_v22 = vmul.f32 %v791_v15, %v2093_v58  ;;  %v793_v23 = vmul.f32 %v791_v15, %v2096_v61  ;;  %v803_v37 = vstv %s2135_s6  ;;  %s2249_s30 = sld [smem:[#allocation6 + $0x105]]  ;;  %s2253_s6 = sld [smem:[#allocation6 + $0x106]] }
  0xa9   : > { %v770_v19 = vadd.f32 %v768_v29, %v764_v32  ;;  %v771_v21 = vadd.f32 %v769_v30, %v765_v0  ;;  %v798_v57 = vmul.f32 %v797_v34, %v2099_v35  ;;  %v799_v24 = vmul.f32 %v797_v34, %v2106_v36 }
  0xaa   : > { %v809_v38 = vstv %s2149_s25  ;;  %v804_v20 = vmul.f32 %v803_v37, %v2144_v18  ;;  %v805_v25 = vmul.f32 %v803_v37, %v2147_v46  ;;  %v831_v26 = vstv %s2153_s7  ;;  %s2261_s25 = sld [smem:[#allocation6 + $0x107]]  ;;  %s2267_s7 = sld [smem:[#allocation6 + $0x108]] }
  0xab   : > { %v776_v41 = vadd.f32 %v774_v54, %v770_v19  ;;  %v777_v42 = vadd.f32 %v775_v59, %v771_v21  ;;  %v835_v28 = vstv %s2155_s8  ;;  %v841_v49 = vstv %s2161_s9  ;;  %s2277_s8 = sld [smem:[#allocation6 + $0x109]]  ;;  %s2279_s9 = sld [smem:[#allocation6 + $0x10a]] }
  0xac   : > { %v847_v33 = vstv %s2163_s10  ;;  %v832_v29 = vmul.f32 %v831_v26, %v2059_v43  ;;  %v833_v30 = vmul.f32 %v831_v26, %v2062_v44  ;;  %v836_v54 = vmul.f32 %v835_v28, %v2065_v45  ;;  %s2285_s10 = sld [smem:[#allocation6 + $0x10b]] }
  0xad   : > { %v782_v50 = vadd.f32 %v780_v51, %v776_v41  ;;  %v783_v53 = vadd.f32 %v781_v63, %v777_v42  ;;  %v837_v59 = vmul.f32 %v835_v28, %v2068_v47  ;;  %v842_v60 = vmul.f32 %v841_v49, %v2071_v48 }
  0xae   : > { %v843_v31 = vmul.f32 %v841_v49, %v2076_v27  ;;  %v848_v51 = vmul.f32 %v847_v33, %v2138_v39  ;;  %v849_v63 = vmul.f32 %v847_v33, %v2141_v40  ;;  %v838_v15 = vadd.f32 %v836_v54, %v832_v29 }
  0xaf   : > { %v788_v32 = vadd.f32 %v786_v52, %v782_v50  ;;  %v789_v0 = vadd.f32 %v787_v14, %v783_v53  ;;  %v839_v34 = vadd.f32 %v837_v59, %v833_v30  ;;  %v853_v19 = vstv %s2177_s11  ;;  %s2288_s11 = sld [smem:[#allocation7 + $0x2]] }
  0xb0   : > { %v859_v21 = vstv %s2179_s12  ;;  %v854_v42 = vmul.f32 %v853_v19, %v1909_v3  ;;  %v855_v26 = vmul.f32 %v853_v19, %v1913_v4  ;;  %v844_v52 = vadd.f32 %v842_v60, %v838_v15  ;;  %s2290_s12 = sld [smem:[#allocation6 + $0x180]] }
  0xb1   : > { %v794_v37 = vadd.f32 %v792_v22, %v788_v32  ;;  %v795_v41 = vadd.f32 %v793_v23, %v789_v0  ;;  %v845_v14 = vadd.f32 %v843_v31, %v839_v34  ;;  %v860_v28 = vmul.f32 %v859_v21, %v1963_v16 }
  0xb2   : > { %v861_v49 = vmul.f32 %v859_v21, %v1965_v17  ;;  %v865_v53 = vstv %s2189_s13  ;;  %v871_v22 = vstv %s2191_s14  ;;  %v850_v23 = vadd.f32 %v848_v51, %v844_v52  ;;  %s2297_s13 = sld [smem:[#allocation6 + $0x181]]  ;;  %s2299_s14 = sld [smem:[#allocation6 + $0x182]] }
  0xb3   : > { %v800_v33 = vadd.f32 %v798_v57, %v794_v37  ;;  %v801_v50 = vadd.f32 %v799_v24, %v795_v41  ;;  %v851_v29 = vadd.f32 %v849_v63, %v845_v14  ;;  %v866_v30 = vmul.f32 %v865_v53, %v2031_v1 }
  0xb4   : > { %v867_v54 = vmul.f32 %v865_v53, %v2033_v2  ;;  %v872_v31 = vmul.f32 %v871_v22, %v2111_v13  ;;  %v873_v57 = vmul.f32 %v871_v22, %v2113_v62  ;;  %v856_v24 = vadd.f32 %v854_v42, %v850_v23 }
  0xb5   : > { %v806_v59 = vadd.f32 %v804_v20, %v800_v33  ;;  %v807_v60 = vadd.f32 %v805_v25, %v801_v50  ;;  %v857_v32 = vadd.f32 %v855_v26, %v851_v29  ;;  %v877_v0 = vstv %s2203_s15  ;;  %s2303_s15 = sld [smem:[#allocation6 + $0x183]] }
  0xb6   : > { %v883_v51 = vstv %s2205_s16  ;;  %v878_v34 = vmul.f32 %v877_v0, %v2087_v55  ;;  %v879_v20 = vmul.f32 %v877_v0, %v2090_v56  ;;  %v862_v25 = vadd.f32 %v860_v28, %v856_v24  ;;  %s2305_s16 = sld [smem:[#allocation6 + $0x184]] }
  0xb7   : > { %v810_v63 = vadd.f32 %v809_v38, %v806_v59  ;;  %v811_v15 = vadd.f32 %v809_v38, %v807_v60  ;;  %v863_v19 = vadd.f32 %v861_v49, %v857_v32  ;;  %v884_v21 = vmul.f32 %v883_v51, %v2093_v58 }
  0xb8   : > { %v885_v37 = vmul.f32 %v883_v51, %v2096_v61  ;;  %v889_v38 = vstv %s2213_s17  ;;  %v895_v26 = vstv %s2215_s21  ;;  %v868_v52 = vadd.f32 %v866_v30, %v862_v25  ;;  %s2316_s17 = sld [smem:[#allocation6 + $0x185]]  ;;  %s2318_s21 = sld [smem:[#allocation6 + $0x186]] }
  0xb9   : > { %v812_v41 = vadd.f32 %v810_v63, %v1909_v3  ;;  %v813_v42 = vadd.f32 %v811_v15, %v1913_v4  ;;  %v869_v14 = vadd.f32 %v867_v54, %v863_v19  ;;  %v890_v33 = vmul.f32 %v889_v38, %v2099_v35 }
  0xba   : > { %v891_v28 = vmul.f32 %v889_v38, %v2106_v36  ;;  %v896_v53 = vmul.f32 %v895_v26, %v2144_v18  ;;  %v897_v22 = vmul.f32 %v895_v26, %v2147_v46  ;;  %v874_v23 = vadd.f32 %v872_v31, %v868_v52 }
  0xbb   : > { %v1315_v49 = vmul.f32 -1.442695, %v812_v41  ;;  %v1316_v50 = vmul.f32 -1.442695, %v813_v42  ;;  %v875_v29 = vadd.f32 %v873_v57, %v869_v14  ;;  %v901_v30 = vstv %s2223_s22  ;;  %s1371_s22 = sshll.u32 %s2425_s18, 6 }
  0xbc   : > { %v924_v54 = vstv %s2225_s23  ;;  %v928_v24 = vstv %s2229_s24  ;;  %v880_v32 = vadd.f32 %v878_v34, %v874_v23  ;;  %v934_v31 = vstv %s2233_s26  ;;  %s2334_s23 = sld [smem:[#allocation6 + $0x187]]  ;;  %s2339_s26 = scalar_lea.vmem %s2410_s5, %s1371_s22 }
  0xbd   : > { %1437 = vpow2.f32 %v1315_v49  ;;  %v925_v59 = vmul.f32 %v924_v54, %v2059_v43  ;;  %v926_v60 = vmul.f32 %v924_v54, %v2062_v44  ;;  %v881_v0 = vadd.f32 %v879_v20, %v875_v29 }
  0xbe   : > { %1439 = vpow2.f32 %v1316_v50  ;;  %v929_v51 = vmul.f32 %v928_v24, %v2065_v45  ;;  %v930_v63 = vmul.f32 %v928_v24, %v2068_v47  ;;  %v940_v15 = vstv %s2237_s28  ;;  %s2344_s28 = sld [smem:[#allocation6 + $0x188]] }
  0xbf   : > { %v946_v57 = vstv %s2239_s29  ;;  %v886_v25 = vadd.f32 %v884_v21, %v880_v32  ;;  %v887_v19 = vadd.f32 %v885_v37, %v881_v0  ;;  %v935_v42 = vmul.f32 %v934_v31, %v2071_v48  ;;  %s2350_s29 = sld [smem:[#allocation6 + $0x189]] }
  0xc0   : > { %v931_v41 = vadd.f32 %v929_v51, %v925_v59  ;;  %v932_v34 = vadd.f32 %v930_v63, %v926_v60  ;;  %v936_v20 = vmul.f32 %v934_v31, %v2076_v27  ;;  %v941_v38 = vmul.f32 %v940_v15, %v2138_v39 }
  0xc1   : > { %v942_v26 = vmul.f32 %v940_v15, %v2141_v40  ;;  %v892_v52 = vadd.f32 %v890_v33, %v886_v25  ;;  %v893_v14 = vadd.f32 %v891_v28, %v887_v19  ;;  %v947_v50 = vmul.f32 %v946_v57, %v1909_v3 }
  0xc2   : > { %v937_v49 = vadd.f32 %v935_v42, %v931_v41  ;;  %v938_v23 = vadd.f32 %v936_v20, %v932_v34  ;;  %v948_v29 = vmul.f32 %v946_v57, %v1913_v4  ;;  %v952_v21 = vstv %s2249_s30  ;;  %s2352_s30 = sld [smem:[#allocation6 + $0x18a]] }
  0xc3   : > { %v958_v37 = vstv %s2253_s6  ;;  %v898_v54 = vadd.f32 %v896_v53, %v892_v52  ;;  %v899_v59 = vadd.f32 %v897_v22, %v893_v14  ;;  %v953_v24 = vmul.f32 %v952_v21, %v1963_v16  ;;  %s2359_s6 = sld [smem:[#allocation6 + $0x18b]] }
  0xc4   : > { %v943_v60 = vadd.f32 %v941_v38, %v937_v49  ;;  %v944_v33 = vadd.f32 %v942_v26, %v938_v23  ;;  %v954_v28 = vmul.f32 %v952_v21, %v1965_v17  ;;  %v959_v32 = vmul.f32 %v958_v37, %v2031_v1 }
  0xc5   : > { %v960_v0 = vmul.f32 %v958_v37, %v2033_v2  ;;  %v902_v51 = vadd.f32 %v901_v30, %v898_v54  ;;  %v903_v63 = vadd.f32 %v901_v30, %v899_v59  ;;  %v964_v15 = vstv %s2261_s25  ;;  %s2372_s25 = sld [smem:[#allocation7 + $0x3]] }
  0xc6   : > { %v949_v31 = vadd.f32 %v947_v50, %v943_v60  ;;  %v950_v22 = vadd.f32 %v948_v29, %v944_v33  ;;  %v965_v57 = vmul.f32 %v964_v15, %v2111_v13  ;;  %v966_v25 = vmul.f32 %v964_v15, %v2113_v62 }
  0xc7   : > { %v1438_v53 = vpop.eup %1437  ;;  %v970_v19 = vstv %s2267_s7  ;;  %v904_v34 = vadd.f32 %v902_v51, %v1963_v16  ;;  %v905_v20 = vadd.f32 %v903_v63, %v1965_v17  ;;  %v976_v21 = vstv %s2277_s8 }
  0xc8   : > { %v1440_v41 = vpop.eup %1439  ;;  %v820_v42 = vadd.f32 1.0, %v1438_v53  ;;  %v955_v30 = vadd.f32 %v953_v24, %v949_v31  ;;  %v956_v26 = vadd.f32 %v954_v28, %v950_v22  ;;  %v971_v52 = vmul.f32 %v970_v19, %v2087_v55 }
  0xc9   : > { %v821_v38 = vadd.f32 1.0, %v1440_v41  ;;  %v972_v14 = vmul.f32 %v970_v19, %v2090_v56  ;;  %v1330_v49 = vmul.f32 -1.442695, %v904_v34  ;;  %v1331_v50 = vmul.f32 -1.442695, %v905_v20 }
  0xca   : > { %1441 = vrcp.f32 %v820_v42  ;;  %v961_v23 = vadd.f32 %v959_v32, %v955_v30  ;;  %v962_v29 = vadd.f32 %v960_v0, %v956_v26  ;;  %v982_v37 = vstv %s2279_s9 }
  0xcb   : > { %1443 = vrcp.f32 %v821_v38  ;;  %v977_v59 = vmul.f32 %v976_v21, %v2093_v58  ;;  %v978_v60 = vmul.f32 %v976_v21, %v2096_v61  ;;  %v983_v33 = vmul.f32 %v982_v37, %v2099_v35 }
  0xcc   : > { %1445 = vpow2.f32 %v1330_v49  ;;  %v967_v54 = vadd.f32 %v965_v57, %v961_v23  ;;  %v968_v24 = vadd.f32 %v966_v25, %v962_v29  ;;  %v984_v28 = vmul.f32 %v982_v37, %v2106_v36 }
  0xcd   : > { %1447 = vpow2.f32 %v1331_v50  ;;  %v988_v51 = vstv %s2285_s10  ;;  %v994_v0 = vstv %s2288_s11  ;;  %v1017_v63 = vstv %s2290_s12 }
  0xce   : > { %v973_v32 = vadd.f32 %v971_v52, %v967_v54  ;;  %v974_v31 = vadd.f32 %v972_v14, %v968_v24  ;;  %v989_v15 = vmul.f32 %v988_v51, %v2144_v18  ;;  %v990_v53 = vmul.f32 %v988_v51, %v2147_v46 }
  0xcf   : > { %v1018_v22 = vmul.f32 %v1017_v63, %v2059_v43  ;;  %v1019_v25 = vmul.f32 %v1017_v63, %v2062_v44  ;;  %v1021_v19 = vstv %s2297_s13  ;;  %v1027_v41 = vstv %s2299_s14 }
  0xd0   : > { %v979_v57 = vadd.f32 %v977_v59, %v973_v32  ;;  %v980_v42 = vadd.f32 %v978_v60, %v974_v31  ;;  %v1022_v34 = vmul.f32 %v1021_v19, %v2065_v45  ;;  %v1023_v20 = vmul.f32 %v1021_v19, %v2068_v47 }
  0xd1   : > { %v1028_v30 = vmul.f32 %v1027_v41, %v2071_v48  ;;  %v1029_v26 = vmul.f32 %v1027_v41, %v2076_v27  ;;  %v1033_v52 = vstv %s2303_s15  ;;  %v1039_v14 = vstv %s2305_s16 }
  0xd2   : > { %v985_v38 = vadd.f32 %v983_v33, %v979_v57  ;;  %v986_v49 = vadd.f32 %v984_v28, %v980_v42  ;;  %v1024_v43 = vadd.f32 %v1022_v34, %v1018_v22  ;;  %v1025_v50 = vadd.f32 %v1023_v20, %v1019_v25 }
  0xd3   : > { %v1034_v44 = vmul.f32 %v1033_v52, %v2138_v39  ;;  %v1035_v47 = vmul.f32 %v1033_v52, %v2141_v40  ;;  %v1040_v48 = vmul.f32 %v1039_v14, %v1909_v3  ;;  %v1041_v27 = vmul.f32 %v1039_v14, %v1913_v4 }
  0xd4   : > { %v1442_v23 = vpop.eup %1441  ;;  %v991_v45 = vadd.f32 %v989_v15, %v985_v38  ;;  %v992_v21 = vadd.f32 %v990_v53, %v986_v49  ;;  %v1030_v37 = vadd.f32 %v1028_v30, %v1024_v43  ;;  %v1031_v54 = vadd.f32 %v1029_v26, %v1025_v50 }
  0xd5   : > { %v1444_v39 = vpop.eup %1443  ;;  %v826_v29 = vmul.f32 %v1442_v23, %v1701_v5  ;;  %v1045_v33 = vstv %s2316_s17  ;;  %v1051_v40 = vstv %s2318_s21  ;;  %v1063_v20 = vstv %s2344_s28 }
  0xd6   : > { %v1446_v59 = vpop.eup %1445  ;;  %v827_v60 = vmul.f32 %v1444_v39, %v1703_v6  ;;  %v995_v24 = vadd.f32 %v994_v0, %v991_v45  ;;  %v996_v28 = vadd.f32 %v994_v0, %v992_v21  ;;  %v1036_v32 = vadd.f32 %v1034_v44, %v1030_v37 }
  0xd7   : > { %v1448_v3 = vpop.eup %1447  ;;  %828 = vst [vmem:[%s2339_s26] sm:$0xff] %v826_v29  ;;  %v912_v4 = vadd.f32 1.0, %v1446_v59  ;;  %v1037_v5 = vadd.f32 %v1035_v47, %v1031_v54  ;;  %v1046_v6 = vmul.f32 %v1045_v33, %v1963_v16  ;;  %v1047_v31 = vmul.f32 %v1045_v33, %v1965_v17 }
  0xd8   : > { %829 = vst [vmem:[%s2339_s26 + $0x8] sm:$0xff] %v827_v60  ;;  %v913_v51 = vadd.f32 1.0, %v1448_v3  ;;  %v997_v63 = vadd.f32 %v995_v24, %v2031_v1  ;;  %v998_v15 = vadd.f32 %v996_v28, %v2033_v2  ;;  %v1042_v53 = vadd.f32 %v1040_v48, %v1036_v32 }
  0xd9   : > { %1449 = vrcp.f32 %v912_v4  ;;  %v1043_v22 = vadd.f32 %v1041_v27, %v1037_v5  ;;  %v1052_v57 = vmul.f32 %v1051_v40, %v2031_v1  ;;  %v1053_v25 = vmul.f32 %v1051_v40, %v2033_v2 }
  0xda   : > { %1451 = vrcp.f32 %v913_v51  ;;  %v1347_v0 = vmul.f32 -1.442695, %v997_v63  ;;  %v1348_v19 = vmul.f32 -1.442695, %v998_v15  ;;  %v1048_v16 = vadd.f32 %v1046_v6, %v1042_v53 }
  0xdb   : > { %v1049_v41 = vadd.f32 %v1047_v31, %v1043_v22  ;;  %v1057_v17 = vstv %s2334_s23  ;;  %v1064_v26 = vmul.f32 %v1063_v20, %v2087_v55  ;;  %v1065_v1 = vmul.f32 %v1063_v20, %v2090_v56 }
  0xdc   : > { %1453 = vpow2.f32 %v1347_v0  ;;  %v1058_v42 = vmul.f32 %v1057_v17, %v2111_v13  ;;  %v1059_v34 = vmul.f32 %v1057_v17, %v2113_v62  ;;  %v1054_v30 = vadd.f32 %v1052_v57, %v1048_v16 }
  0xdd   : > { %1455 = vpow2.f32 %v1348_v19  ;;  %v1055_v38 = vadd.f32 %v1053_v25, %v1049_v41  ;;  %v1069_v52 = vstv %s2350_s29  ;;  %v1075_v2 = vstv %s2352_s30 }
  0xde   : > { %v1060_v14 = vadd.f32 %v1058_v42, %v1054_v30  ;;  %v1070_v43 = vmul.f32 %v1069_v52, %v2093_v58  ;;  %v1071_v50 = vmul.f32 %v1069_v52, %v2096_v61  ;;  %v1081_v44 = vstv %s2359_s6 }
  0xdf   : > { %v1061_v49 = vadd.f32 %v1059_v34, %v1055_v38  ;;  %v1076_v47 = vmul.f32 %v1075_v2, %v2099_v35  ;;  %v1077_v55 = vmul.f32 %v1075_v2, %v2106_v36  ;;  %v1082_v39 = vmul.f32 %v1081_v44, %v2144_v18 }
  0xe0   : > { %v1066_v23 = vadd.f32 %v1064_v26, %v1060_v14  ;;  %v1083_v29 = vmul.f32 %v1081_v44, %v2147_v46  ;;  %v1087_v35 = vstv %s2372_s25 }
  0xe1   : > { %v1067_v45 = vadd.f32 %v1065_v1, %v1061_v49 }
  0xe2   : > { %v1072_v48 = vadd.f32 %v1070_v43, %v1066_v23 }
  0xe3   : > { %v1450_v56 = vpop.eup %1449  ;;  %v1073_v27 = vadd.f32 %v1071_v50, %v1067_v45 }
  0xe4   : > { %v1452_v58 = vpop.eup %1451  ;;  %v918_v61 = vmul.f32 %v1450_v56, %v1705_v7  ;;  %v1078_v37 = vadd.f32 %v1076_v47, %v1072_v48 }
  0xe5   : > { %v919_v21 = vmul.f32 %v1452_v58, %v1707_v8  ;;  %v1079_v54 = vadd.f32 %v1077_v55, %v1073_v27 }
  0xe6   : > { %v1454_v59 = vpop.eup %1453  ;;  %1332 = vst [vmem:[%s2339_s26 + $0x10] sm:$0xff] %v918_v61  ;;  %v1084_v24 = vadd.f32 %v1082_v39, %v1078_v37 }
  0xe7   : > { %v1456_v60 = vpop.eup %1455  ;;  %1333 = vst [vmem:[%s2339_s26 + $0x18] sm:$0xff] %v919_v21  ;;  %v1005_v36 = vadd.f32 1.0, %v1454_v59  ;;  %v1085_v33 = vadd.f32 %v1083_v29, %v1079_v54 }
  0xe8   : > { %v1006_v40 = vadd.f32 1.0, %v1456_v60  ;;  %v1088_v18 = vadd.f32 %v1087_v35, %v1084_v24 }
  0xe9   : > { %1457 = vrcp.f32 %v1005_v36  ;;  %v1089_v46 = vadd.f32 %v1087_v35, %v1085_v33 }
  0xea   : > { %1459 = vrcp.f32 %v1006_v40  ;;  %v1090_v7 = vadd.f32 %v1088_v18, %v2111_v13 }
  0xeb   : > { %v1091_v8 = vadd.f32 %v1089_v46, %v2113_v62 }
  0xec   : > { %v1364_v3 = vmul.f32 -1.442695, %v1090_v7 }
  0xed   : > { %v1365_v4 = vmul.f32 -1.442695, %v1091_v8 }
  0xee   : > { %1461 = vpow2.f32 %v1364_v3 }
  0xef   : > { %1463 = vpow2.f32 %v1365_v4 }
  0xf3   : > { %v1458_v28 = vpop.eup %1457 }
  0xf4   : > { %v1460_v32 = vpop.eup %1459  ;;  %v1011_v5 = vmul.f32 %v1458_v28, %v1711_v9 }
  0xf5   : > { %v1012_v51 = vmul.f32 %v1460_v32, %v1713_v10 }
  0xf6   : > { %1349 = vst [vmem:[%s2339_s26 + $0x20] sm:$0xff] %v1011_v5 }
  0xf7   : > { %1350 = vst [vmem:[%s2339_s26 + $0x28] sm:$0xff] %v1012_v51 }
  0xf8   : > { %v1462_v63 = vpop.eup %1461 }
  0xf9   : > { %v1464_v6 = vpop.eup %1463  ;;  %v1098_v31 = vadd.f32 1.0, %v1462_v63 }
  0xfa   : > { %v1099_v13 = vadd.f32 1.0, %v1464_v6 }
  0xfb   : > { %1465 = vrcp.f32 %v1098_v31 }
  0xfc   : > { %1467 = vrcp.f32 %v1099_v13 }
 0x105   : > { %v1466_v62 = vpop.eup %1465 }
 0x106   : > { %v1468_v15 = vpop.eup %1467  ;;  %v1104_v53 = vmul.f32 %v1466_v62, %v1715_v11 }
 0x107   : > { %v1105_v22 = vmul.f32 %v1468_v15, %v1717_v12 }
 0x108   : > { %1366 = vst [vmem:[%s2339_s26 + $0x30] sm:$0xff] %v1104_v53 }
 0x109   : > { %1367 = vst [vmem:[%s2339_s26 + $0x38] sm:$0xff] %v1105_v22 }
 0x10a PF: > { %s18_s20 = sadd.s32 1, %s1563_s20   ;;  %s2420_s18 = smov %s1559_s19 }
 0x10b   : > { %p15_p8 = scmp.ge.s32.totalorder %s18_s20, 4   ;;  %s2421_s19 = smov %s2423_s27 }
 0x10d   :  { %17 = sbr.rel (!%p15_p8) target bundleno = 4 (0x4), region = 90 }
 0x114   :  { %1139 = vsyncpa [#allocation3], 1 }
 0x115   :  { %1141 = vsyncpa [#allocation3 + $0x1], 1 }
 0x116   :  { %1142 = vsyncpa [#allocation5], 1 }
 0x117   :  { %1143 = vsyncpa [#allocation8], 1 }

</bundles_post_ra>
